<compile_context>
chip_gen: v5e
topology: v5e:2x2
jax: 0.10.0
libtpu: 0.0.40
codegen_flags: <defaults>
</compile_context>

<pallas_src>
import jax
import jax.numpy as jnp
import numpy as np
from jax.experimental import pallas as pl
from jax.experimental.pallas import tpu as pltpu

EPS = 1e-5


# ----------------------------- kernel helpers ------------------------------
def _pad_hw(x):
    """Zero-pad H and W (axes 1, 2) of an NHWC value by 1 on each side."""
    n, h, w, c = x.shape
    zh = jnp.zeros((n, 1, w, c), x.dtype)
    x = jnp.concatenate([zh, x, zh], axis=1)
    zw = jnp.zeros((n, h + 2, 1, c), x.dtype)
    return jnp.concatenate([zw, x, zw], axis=2)


def _conv3x3(x, w_ref):
    """3x3 'same' conv as ONE packed MXU contraction (K = 9*Cin).

    x:     (1, H, W, Cin) value (one batch sample / grid step)
    w_ref: Ref of shape (9*Cin, Cout), bf16, row index = (dh*3 + dw)*Cin + ci
    returns (H*W, Cout) f32
    """
    _, h, w, cin = x.shape
    # Cast to bf16 before building patches: exact (pad/slice/concat only),
    # and the 9-tap lane concatenation then moves half the bytes.
    xp = _pad_hw(x.astype(jnp.bfloat16))                   # (1, H+2, W+2, Cin)
    # 3 column-shifted views built once and reused for all 3 row offsets;
    # row slices are cheap major-dim addressing.
    cols = [xp[:, :, dw:dw + w, :] for dw in range(3)]     # each (1, H+2, W, Cin)
    taps = [cols[dw][:, dh:dh + h, :, :]                   # each (1, H, W, Cin)
            for dh in range(3) for dw in range(3)]
    patches = jnp.concatenate(taps, axis=-1)               # (1, H, W, 9*Cin)
    patches = patches.reshape(h * w, 9 * cin)
    return jnp.dot(patches, w_ref[...], preferred_element_type=jnp.float32)


def _channel_stats(y):
    """Per-channel (sum, sum-of-squares) of y: (R, C) -> (1, 2, C) f32."""
    s = jnp.sum(y, axis=0, keepdims=True)                  # (1, C)
    q = jnp.sum(y * y, axis=0, keepdims=True)              # (1, C)
    return jnp.concatenate([s, q], axis=0).reshape(1, 2, -1)


# --------------------------------- kernels ----------------------------------
def pool_conv1_kernel(x_ref, w1_ref, y1_ref, s1_ref):
    """MaxPool2d(2) + Conv3x3 (no bias) + per-sample BN1 partial stats."""
    _, h, w, _ = x_ref.shape
    hp, wp = h // 2, w // 2
    cmid = w1_ref.shape[-1]

    # MaxPool2d(2): max over the four strided 2x2 phases.
    x00 = x_ref[:, pl.ds(0, hp, 2), pl.ds(0, wp, 2), :]
    x01 = x_ref[:, pl.ds(0, hp, 2), pl.ds(1, wp, 2), :]
    x10 = x_ref[:, pl.ds(1, hp, 2), pl.ds(0, wp, 2), :]
    x11 = x_ref[:, pl.ds(1, hp, 2), pl.ds(1, wp, 2), :]
    pooled = jnp.maximum(jnp.maximum(x00, x01),
                         jnp.maximum(x10, x11)).astype(jnp.float32)

    y = _conv3x3(pooled, w1_ref)                           # (hp*wp, cmid) f32
    y1_ref[...] = y.reshape(1, hp, wp, cmid).astype(y1_ref.dtype)  # bf16 store
    s1_ref[...] = _channel_stats(y)                        # stats from f32


def bn_conv2_kernel(y1_ref, ss1_ref, w2_ref, y2_ref, s2_ref):
    """Folded BN1 (scale/shift) + ReLU, Conv3x3 (no bias), BN2 partial stats."""
    _, hp, wp, _ = y1_ref.shape
    cout = w2_ref.shape[-1]
    ss = ss1_ref[...]                                      # (2, cmid) f32
    a = jnp.maximum(y1_ref[...].astype(jnp.float32) * ss[0:1] + ss[1:2], 0.0)
    y = _conv3x3(a, w2_ref)                                # (hp*wp, cout) f32
    y2_ref[...] = y.reshape(1, hp, wp, cout).astype(y2_ref.dtype)
    s2_ref[...] = _channel_stats(y)


def bn_relu_kernel(y2_ref, ss2_ref, o_ref):
    """Folded BN2 (scale/shift) + ReLU."""
    ss = ss2_ref[...]                                      # (2, cout) f32
    o_ref[...] = jnp.maximum(y2_ref[...] * ss[0:1] + ss[1:2],
                             0.0).astype(o_ref.dtype)


# --------------------------------- wrapper ---------------------------------
def _fold_bn(stats, gamma, beta, count):
    """Fold batch stats + BN affine into a single per-channel (scale, shift)."""
    tot = jnp.sum(stats, axis=0)                            # (2, C)
    mean = tot[0] / count
    var = tot[1] / count - jnp.square(mean)                 # biased variance
    scale = gamma.reshape(-1) * jax.lax.rsqrt(var + EPS)
    shift = beta.reshape(-1) - mean * scale
    return jnp.stack([scale, shift], axis=0).astype(jnp.float32)   # (2, C)


def down_forward(x_nchw, params):
    """Down.forward. Input/output are NCHW (PyTorch convention)."""
    w1, _b1, g1, be1, w2, _b2, g2, be2 = params  # conv biases cancel under BN
    n, cin, h, wd = x_nchw.shape
    hp, wp = h // 2, wd // 2
    cmid, cout = w1.shape[-1], w2.shape[-1]
    count = float(n * hp * wp)

    x_nhwc = jnp.transpose(x_nchw, (0, 2, 3, 1))
    w1p = w1.reshape(9 * cin, cmid).astype(jnp.bfloat16)   # packed-K, MXU-native
    w2p = w2.reshape(9 * cmid, cout).astype(jnp.bfloat16)

    cparams = pltpu.CompilerParams(
        dimension_semantics=("parallel",),
        vmem_limit_bytes=32 * 1024 * 1024,
    )

    # Pass 1: maxpool + conv1, per-sample BN1 partial stats.
    y1_raw, s1 = pl.pallas_call(
        pool_conv1_kernel,
        grid=(n,),
        out_shape=(jax.ShapeDtypeStruct((n, hp, wp, cmid), jnp.bfloat16),
                   jax.ShapeDtypeStruct((n, 2, cmid), jnp.float32)),
        in_specs=[pl.BlockSpec((1, h, wd, cin), lambda i: (i, 0, 0, 0)),
                  pl.BlockSpec((9 * cin, cmid), lambda i: (0, 0))],
        out_specs=(pl.BlockSpec((1, hp, wp, cmid), lambda i: (i, 0, 0, 0)),
                   pl.BlockSpec((1, 2, cmid), lambda i: (i, 0, 0))),
        compiler_params=cparams,
    )(x_nhwc, w1p)
    ss1 = _fold_bn(s1, g1, be1, count)                      # (2, cmid)

    # Pass 2: BN1 + ReLU + conv2, per-sample BN2 partial stats.
    y2_raw, s2 = pl.pallas_call(
        bn_conv2_kernel,
        grid=(n,),
        out_shape=(jax.ShapeDtypeStruct((n, hp, wp, cout), jnp.float32),
                   jax.ShapeDtypeStruct((n, 2, cout), jnp.float32)),
        in_specs=[pl.BlockSpec((1, hp, wp, cmid), lambda i: (i, 0, 0, 0)),
                  pl.BlockSpec((2, cmid), lambda i: (0, 0)),
                  pl.BlockSpec((9 * cmid, cout), lambda i: (0, 0))],
        out_specs=(pl.BlockSpec((1, hp, wp, cout), lambda i: (i, 0, 0, 0)),
                   pl.BlockSpec((1, 2, cout), lambda i: (i, 0, 0))),
        compiler_params=cparams,
    )(y1_raw, ss1, w2p)
    ss2 = _fold_bn(s2, g2, be2, count)                      # (2, cout)

    # Pass 3: BN2 + ReLU.
    out_nhwc = pl.pallas_call(
        bn_relu_kernel,
        grid=(n,),
        out_shape=jax.ShapeDtypeStruct((n, hp, wp, cout), jnp.float32),
        in_specs=[pl.BlockSpec((1, hp, wp, cout), lambda i: (i, 0, 0, 0)),
                  pl.BlockSpec((2, cout), lambda i: (0, 0))],
        out_specs=pl.BlockSpec((1, hp, wp, cout), lambda i: (i, 0, 0, 0)),
        compiler_params=cparams,
    )(y2_raw, ss2)

    return jnp.transpose(out_nhwc, (0, 3, 1, 2))


# --------------------------- pure-JAX reference -----------------------------
def _conv3x3_ref(x, w9, b):  # x: NCHW
    cin, cout = w9.shape[1], w9.shape[2]
    w_oihw = jnp.transpose(w9.reshape(3, 3, cin, cout), (3, 2, 0, 1))
    y = jax.lax.conv_general_dilated(
        x, w_oihw, (1, 1), ((1, 1), (1, 1)),
        dimension_numbers=("NCHW", "OIHW", "NCHW"))
    return y + b.reshape(1, cout, 1, 1)


def _bn_relu_ref(y, gamma, beta):
    mean = jnp.mean(y, axis=(0, 2, 3), keepdims=True)
    var = jnp.mean(jnp.square(y - mean), axis=(0, 2, 3), keepdims=True)
    yhat = (y - mean) * jax.lax.rsqrt(var + EPS)
    return jnp.maximum(yhat * gamma.reshape(1, -1, 1, 1)
                       + beta.reshape(1, -1, 1, 1), 0.0)


def down_ref(x, params):
    w1, b1, g1, be1, w2, b2, g2, be2 = params
    n, c, h, wd = x.shape
    pooled = x.reshape(n, c, h // 2, 2, wd // 2, 2).max(axis=(3, 5))
    y = _bn_relu_ref(_conv3x3_ref(pooled, w1, b1), g1, be1)
    y = _bn_relu_ref(_conv3x3_ref(y, w2, b2), g2, be2)
    return y


# ----------------------------------- main -----------------------------------
if __name__ == "__main__":
    key = jax.random.PRNGKey(0)
    N, CIN, H, W = 2, 4, 16, 16          # Down(in_channels=4, out_channels=8)
    CMID = COUT = 8
    ks = jax.random.split(key, 9)

    x = jax.random.normal(ks[0], (N, CIN, H, W), jnp.float32)
    # conv weights stored as (9, Cin, Cout); PyTorch equiv: w_torch[co,ci,dh,dw]
    w1 = 0.1 * jax.random.normal(ks[1], (9, CIN, CMID), jnp.float32)
    b1 = 0.1 * jax.random.normal(ks[2], (1, CMID), jnp.float32)
    g1 = 1.0 + 0.1 * jax.random.normal(ks[3], (1, CMID), jnp.float32)   # BN weight
    be1 = 0.1 * jax.random.normal(ks[4], (1, CMID), jnp.float32)        # BN bias
    w2 = 0.1 * jax.random.normal(ks[5], (9, CMID, COUT), jnp.float32)
    b2 = 0.1 * jax.random.normal(ks[6], (1, COUT), jnp.float32)
    g2 = 1.0 + 0.1 * jax.random.normal(ks[7], (1, COUT), jnp.float32)
    be2 = 0.1 * jax.random.normal(ks[8], (1, COUT), jnp.float32)
    params = (w1, b1, g1, be1, w2, b2, g2, be2)

    out = jax.block_until_ready(jax.jit(down_forward)(x, params))
    ref = jax.block_until_ready(down_ref(x, params))

    assert out.shape == (N, COUT, H // 2, W // 2), out.shape
    # bf16 MXU operands / bf16 intermediate with f32 accumulation and f32 BN
    # statistics: 2e-2 absorbs the bf16 rounding.
    np.testing.assert_allclose(np.asarray(out), np.asarray(ref),
                               atol=2e-2, rtol=2e-2)
    print("KERNEL_OK")
</pallas_src>

<mosaic_0001>
module attributes {stable_mosaic.version = 11 : i64} {
  func.func @pool_conv1_kernel(%arg0: i32, %arg1: memref<1x16x16x4xf32, #tpu.memory_space<vmem>>, %arg2: memref<36x8xbf16, #tpu.memory_space<vmem>>, %arg3: memref<1x8x8x8xbf16, #tpu.memory_space<vmem>>, %arg4: memref<1x2x8xf32, #tpu.memory_space<vmem>>) attributes {dimension_semantics = [#tpu.dimension_semantics<parallel>], iteration_bounds = array<i64: 2>, scalar_prefetch = 0 : i64, scratch_operands = 0 : i64, tpu.core_type = #tpu.core_type<tc>, window_params = [{transform_indices = @transform_0, window_bounds = array<i64: 1, 16, 16, 4>}, {pipeline_mode = #tpu.pipeline_mode<synchronous>, transform_indices = @transform_1, window_bounds = array<i64: 36, 8>}, {transform_indices = @transform_2, window_bounds = array<i64: 1, 8, 8, 8>}, {transform_indices = @transform_3, window_bounds = array<i64: 1, 2, 8>}]} {
    %c0 = arith.constant 0 : index
    %c0_0 = arith.constant 0 : index
    %c0_1 = arith.constant 0 : index
    %c0_2 = arith.constant 0 : index
    %0 = tpu.strided_load %arg1[%c0, %c0_0, %c0_1, %c0_2] {strides = array<i32: 1, 2, 2, 1>} : memref<1x16x16x4xf32, #tpu.memory_space<vmem>>, vector<1x8x8x4xf32>
    %c0_3 = arith.constant 0 : index
    %c0_4 = arith.constant 0 : index
    %c1 = arith.constant 1 : index
    %c0_5 = arith.constant 0 : index
    %1 = tpu.strided_load %arg1[%c0_3, %c0_4, %c1, %c0_5] {strides = array<i32: 1, 2, 2, 1>} : memref<1x16x16x4xf32, #tpu.memory_space<vmem>>, vector<1x8x8x4xf32>
    %c0_6 = arith.constant 0 : index
    %c1_7 = arith.constant 1 : index
    %c0_8 = arith.constant 0 : index
    %c0_9 = arith.constant 0 : index
    %2 = tpu.strided_load %arg1[%c0_6, %c1_7, %c0_8, %c0_9] {strides = array<i32: 1, 2, 2, 1>} : memref<1x16x16x4xf32, #tpu.memory_space<vmem>>, vector<1x8x8x4xf32>
    %c0_10 = arith.constant 0 : index
    %c1_11 = arith.constant 1 : index
    %c1_12 = arith.constant 1 : index
    %c0_13 = arith.constant 0 : index
    %3 = tpu.strided_load %arg1[%c0_10, %c1_11, %c1_12, %c0_13] {strides = array<i32: 1, 2, 2, 1>} : memref<1x16x16x4xf32, #tpu.memory_space<vmem>>, vector<1x8x8x4xf32>
    %4 = arith.maximumf %0, %1 : vector<1x8x8x4xf32>
    %5 = arith.maximumf %2, %3 : vector<1x8x8x4xf32>
    %6 = arith.maximumf %4, %5 : vector<1x8x8x4xf32>
    %7 = arith.truncf %6 : vector<1x8x8x4xf32> to vector<1x8x8x4xbf16>
    %cst = arith.constant 0.000000e+00 : bf16
    %8 = vector.broadcast %cst : bf16 to vector<1x1x8x4xbf16>
    %9 = tpu.concatenate %8, %7, %8 in 1 : vector<1x1x8x4xbf16>, vector<1x8x8x4xbf16>, vector<1x1x8x4xbf16> -> vector<1x10x8x4xbf16>
    %cst_14 = arith.constant 0.000000e+00 : bf16
    %10 = vector.broadcast %cst_14 : bf16 to vector<1x10x1x4xbf16>
    %11 = tpu.concatenate %10, %9, %10 in 2 : vector<1x10x1x4xbf16>, vector<1x10x8x4xbf16>, vector<1x10x1x4xbf16> -> vector<1x10x10x4xbf16>
    %12 = vector.extract_strided_slice %11 {offsets = [0, 0, 0, 0], sizes = [1, 10, 8, 4], strides = [1, 1, 1, 1]} : vector<1x10x10x4xbf16> to vector<1x10x8x4xbf16>
    %13 = vector.extract_strided_slice %11 {offsets = [0, 0, 1, 0], sizes = [1, 10, 8, 4], strides = [1, 1, 1, 1]} : vector<1x10x10x4xbf16> to vector<1x10x8x4xbf16>
    %14 = vector.extract_strided_slice %11 {offsets = [0, 0, 2, 0], sizes = [1, 10, 8, 4], strides = [1, 1, 1, 1]} : vector<1x10x10x4xbf16> to vector<1x10x8x4xbf16>
    %15 = vector.extract_strided_slice %12 {offsets = [0, 0, 0, 0], sizes = [1, 8, 8, 4], strides = [1, 1, 1, 1]} : vector<1x10x8x4xbf16> to vector<1x8x8x4xbf16>
    %16 = vector.extract_strided_slice %13 {offsets = [0, 0, 0, 0], sizes = [1, 8, 8, 4], strides = [1, 1, 1, 1]} : vector<1x10x8x4xbf16> to vector<1x8x8x4xbf16>
    %17 = vector.extract_strided_slice %14 {offsets = [0, 0, 0, 0], sizes = [1, 8, 8, 4], strides = [1, 1, 1, 1]} : vector<1x10x8x4xbf16> to vector<1x8x8x4xbf16>
    %18 = vector.extract_strided_slice %12 {offsets = [0, 1, 0, 0], sizes = [1, 8, 8, 4], strides = [1, 1, 1, 1]} : vector<1x10x8x4xbf16> to vector<1x8x8x4xbf16>
    %19 = vector.extract_strided_slice %13 {offsets = [0, 1, 0, 0], sizes = [1, 8, 8, 4], strides = [1, 1, 1, 1]} : vector<1x10x8x4xbf16> to vector<1x8x8x4xbf16>
    %20 = vector.extract_strided_slice %14 {offsets = [0, 1, 0, 0], sizes = [1, 8, 8, 4], strides = [1, 1, 1, 1]} : vector<1x10x8x4xbf16> to vector<1x8x8x4xbf16>
    %21 = vector.extract_strided_slice %12 {offsets = [0, 2, 0, 0], sizes = [1, 8, 8, 4], strides = [1, 1, 1, 1]} : vector<1x10x8x4xbf16> to vector<1x8x8x4xbf16>
    %22 = vector.extract_strided_slice %13 {offsets = [0, 2, 0, 0], sizes = [1, 8, 8, 4], strides = [1, 1, 1, 1]} : vector<1x10x8x4xbf16> to vector<1x8x8x4xbf16>
    %23 = vector.extract_strided_slice %14 {offsets = [0, 2, 0, 0], sizes = [1, 8, 8, 4], strides = [1, 1, 1, 1]} : vector<1x10x8x4xbf16> to vector<1x8x8x4xbf16>
    %24 = tpu.concatenate %15, %16, %17, %18, %19, %20, %21, %22, %23 in 3 : vector<1x8x8x4xbf16>, vector<1x8x8x4xbf16>, vector<1x8x8x4xbf16>, vector<1x8x8x4xbf16>, vector<1x8x8x4xbf16>, vector<1x8x8x4xbf16>, vector<1x8x8x4xbf16>, vector<1x8x8x4xbf16>, vector<1x8x8x4xbf16> -> vector<1x8x8x36xbf16>
    %25 = vector.shape_cast %24 : vector<1x8x8x36xbf16> to vector<64x36xbf16>
    %c0_15 = arith.constant 0 : index
    %c0_16 = arith.constant 0 : index
    %26 = vector.load %arg2[%c0_15, %c0_16] : memref<36x8xbf16, #tpu.memory_space<vmem>>, vector<36x8xbf16>
    %cst_17 = arith.constant dense<0.000000e+00> : vector<64x8xf32>
    %27 = tpu.matmul %25, %26, %cst_17 {dimension_numbers = #tpu.dot_dimension_numbers<[1], [0], [0], [1], [0, 0, 1, 1], [], []>} : vector<64x36xbf16>, vector<36x8xbf16>, vector<64x8xf32> -> vector<64x8xf32>
    %28 = vector.shape_cast %27 : vector<64x8xf32> to vector<1x8x8x8xf32>
    %29 = arith.truncf %28 : vector<1x8x8x8xf32> to vector<1x8x8x8xbf16>
    %c0_18 = arith.constant 0 : index
    %c0_19 = arith.constant 0 : index
    %c0_20 = arith.constant 0 : index
    %c0_21 = arith.constant 0 : index
    %30 = vector.load %arg3[%c0_18, %c0_19, %c0_20, %c0_21] : memref<1x8x8x8xbf16, #tpu.memory_space<vmem>>, vector<1x8x8x8xbf16>
    tpu.vector_store %arg3[%c0_18, %c0_19, %c0_20, %c0_21], %29 {strides = array<i32>} : memref<1x8x8x8xbf16, #tpu.memory_space<vmem>>, vector<1x8x8x8xbf16>,
    %cst_22 = arith.constant dense<0.000000e+00> : vector<8xf32>
    %31 = vector.multi_reduction <add>, %27, %cst_22 [0] : vector<64x8xf32> to vector<8xf32>
    %32 = vector.shape_cast %31 : vector<8xf32> to vector<1x8xf32>
    %33 = arith.mulf %27, %27 : vector<64x8xf32>
    %cst_23 = arith.constant dense<0.000000e+00> : vector<8xf32>
    %34 = vector.multi_reduction <add>, %33, %cst_23 [0] : vector<64x8xf32> to vector<8xf32>
    %35 = vector.shape_cast %34 : vector<8xf32> to vector<1x8xf32>
    %36 = tpu.concatenate %32, %35 in 0 : vector<1x8xf32>, vector<1x8xf32> -> vector<2x8xf32>
    %37 = vector.shape_cast %36 : vector<2x8xf32> to vector<1x2x8xf32>
    %c0_24 = arith.constant 0 : index
    %c0_25 = arith.constant 0 : index
    %c0_26 = arith.constant 0 : index
    %38 = vector.load %arg4[%c0_24, %c0_25, %c0_26] : memref<1x2x8xf32, #tpu.memory_space<vmem>>, vector<1x2x8xf32>
    tpu.vector_store %arg4[%c0_24, %c0_25, %c0_26], %37 {strides = array<i32>} : memref<1x2x8xf32, #tpu.memory_space<vmem>>, vector<1x2x8xf32>,
    return
  }
  func.func @transform_0(%arg0: i32) -> (i32, i32, i32, i32) {
    %c0_i32 = arith.constant 0 : i32
    %c0_i32_0 = arith.constant 0 : i32
    %c0_i32_1 = arith.constant 0 : i32
    %c0_i32_2 = arith.constant 0 : i32
    return %arg0, %c0_i32, %c0_i32_0, %c0_i32_1 : i32, i32, i32, i32
  }
  func.func @transform_1(%arg0: i32) -> (i32, i32) {
    %c0_i32 = arith.constant 0 : i32
    %c0_i32_0 = arith.constant 0 : i32
    %c0_i32_1 = arith.constant 0 : i32
    return %c0_i32, %c0_i32_0 : i32, i32
  }
  func.func @transform_2(%arg0: i32) -> (i32, i32, i32, i32) {
    %c0_i32 = arith.constant 0 : i32
    %c0_i32_0 = arith.constant 0 : i32
    %c0_i32_1 = arith.constant 0 : i32
    %c0_i32_2 = arith.constant 0 : i32
    return %arg0, %c0_i32, %c0_i32_0, %c0_i32_1 : i32, i32, i32, i32
  }
  func.func @transform_3(%arg0: i32) -> (i32, i32, i32) {
    %c0_i32 = arith.constant 0 : i32
    %c0_i32_0 = arith.constant 0 : i32
    %c0_i32_1 = arith.constant 0 : i32
    return %arg0, %c0_i32, %c0_i32_0 : i32, i32, i32
  }
}

module attributes {stable_mosaic.version = 11 : i64} {
  func.func @bn_relu_kernel(%arg0: i32, %arg1: memref<1x8x8x8xf32, #tpu.memory_space<vmem>>, %arg2: memref<2x8xf32, #tpu.memory_space<vmem>>, %arg3: memref<1x8x8x8xf32, #tpu.memory_space<vmem>>) attributes {dimension_semantics = [#tpu.dimension_semantics<parallel>], iteration_bounds = array<i64: 2>, scalar_prefetch = 0 : i64, scratch_operands = 0 : i64, tpu.core_type = #tpu.core_type<tc>, window_params = [{transform_indices = @transform_0, window_bounds = array<i64: 1, 8, 8, 8>}, {pipeline_mode = #tpu.pipeline_mode<synchronous>, transform_indices = @transform_1, window_bounds = array<i64: 2, 8>}, {transform_indices = @transform_2, window_bounds = array<i64: 1, 8, 8, 8>}]} {
    %c0 = arith.constant 0 : index
    %c0_0 = arith.constant 0 : index
    %0 = vector.load %arg2[%c0, %c0_0] : memref<2x8xf32, #tpu.memory_space<vmem>>, vector<2x8xf32>
    %c0_1 = arith.constant 0 : index
    %c0_2 = arith.constant 0 : index
    %c0_3 = arith.constant 0 : index
    %c0_4 = arith.constant 0 : index
    %1 = vector.load %arg1[%c0_1, %c0_2, %c0_3, %c0_4] : memref<1x8x8x8xf32, #tpu.memory_space<vmem>>, vector<1x8x8x8xf32>
    %2 = vector.extract_strided_slice %0 {offsets = [0, 0], sizes = [1, 8], strides = [1, 1]} : vector<2x8xf32> to vector<1x8xf32>
    %3 = vector.shape_cast %2 : vector<1x8xf32> to vector<1x1x1x8xf32>
    %4 = vector.broadcast %3 : vector<1x1x1x8xf32> to vector<1x8x8x8xf32>
    %5 = arith.mulf %1, %4 : vector<1x8x8x8xf32>
    %6 = vector.extract_strided_slice %0 {offsets = [1, 0], sizes = [1, 8], strides = [1, 1]} : vector<2x8xf32> to vector<1x8xf32>
    %7 = vector.shape_cast %6 : vector<1x8xf32> to vector<1x1x1x8xf32>
    %8 = vector.broadcast %7 : vector<1x1x1x8xf32> to vector<1x8x8x8xf32>
    %9 = arith.addf %5, %8 : vector<1x8x8x8xf32>
    %cst = arith.constant 0.000000e+00 : f32
    %10 = vector.broadcast %cst : f32 to vector<1x8x8x8xf32>
    %11 = arith.maximumf %9, %10 : vector<1x8x8x8xf32>
    %c0_5 = arith.constant 0 : index
    %c0_6 = arith.constant 0 : index
    %c0_7 = arith.constant 0 : index
    %c0_8 = arith.constant 0 : index
    %12 = vector.load %arg3[%c0_5, %c0_6, %c0_7, %c0_8] : memref<1x8x8x8xf32, #tpu.memory_space<vmem>>, vector<1x8x8x8xf32>
    tpu.vector_store %arg3[%c0_5, %c0_6, %c0_7, %c0_8], %11 {strides = array<i32>} : memref<1x8x8x8xf32, #tpu.memory_space<vmem>>, vector<1x8x8x8xf32>,
    return
  }
  func.func @transform_0(%arg0: i32) -> (i32, i32, i32, i32) {
    %c0_i32 = arith.constant 0 : i32
    %c0_i32_0 = arith.constant 0 : i32
    %c0_i32_1 = arith.constant 0 : i32
    %c0_i32_2 = arith.constant 0 : i32
    return %arg0, %c0_i32, %c0_i32_0, %c0_i32_1 : i32, i32, i32, i32
  }
  func.func @transform_1(%arg0: i32) -> (i32, i32) {
    %c0_i32 = arith.constant 0 : i32
    %c0_i32_0 = arith.constant 0 : i32
    %c0_i32_1 = arith.constant 0 : i32
    return %c0_i32, %c0_i32_0 : i32, i32
  }
  func.func @transform_2(%arg0: i32) -> (i32, i32, i32, i32) {
    %c0_i32 = arith.constant 0 : i32
    %c0_i32_0 = arith.constant 0 : i32
    %c0_i32_1 = arith.constant 0 : i32
    %c0_i32_2 = arith.constant 0 : i32
    return %arg0, %c0_i32, %c0_i32_0, %c0_i32_1 : i32, i32, i32, i32
  }
}

module attributes {stable_mosaic.version = 11 : i64} {
  func.func @bn_conv2_kernel(%arg0: i32, %arg1: memref<1x8x8x8xbf16, #tpu.memory_space<vmem>>, %arg2: memref<2x8xf32, #tpu.memory_space<vmem>>, %arg3: memref<72x8xbf16, #tpu.memory_space<vmem>>, %arg4: memref<1x8x8x8xf32, #tpu.memory_space<vmem>>, %arg5: memref<1x2x8xf32, #tpu.memory_space<vmem>>) attributes {dimension_semantics = [#tpu.dimension_semantics<parallel>], iteration_bounds = array<i64: 2>, scalar_prefetch = 0 : i64, scratch_operands = 0 : i64, tpu.core_type = #tpu.core_type<tc>, window_params = [{transform_indices = @transform_0, window_bounds = array<i64: 1, 8, 8, 8>}, {pipeline_mode = #tpu.pipeline_mode<synchronous>, transform_indices = @transform_1, window_bounds = array<i64: 2, 8>}, {pipeline_mode = #tpu.pipeline_mode<synchronous>, transform_indices = @transform_2, window_bounds = array<i64: 72, 8>}, {transform_indices = @transform_3, window_bounds = array<i64: 1, 8, 8, 8>}, {transform_indices = @transform_4, window_bounds = array<i64: 1, 2, 8>}]} {
    %c0 = arith.constant 0 : index
    %c0_0 = arith.constant 0 : index
    %0 = vector.load %arg2[%c0, %c0_0] : memref<2x8xf32, #tpu.memory_space<vmem>>, vector<2x8xf32>
    %c0_1 = arith.constant 0 : index
    %c0_2 = arith.constant 0 : index
    %c0_3 = arith.constant 0 : index
    %c0_4 = arith.constant 0 : index
    %1 = vector.load %arg1[%c0_1, %c0_2, %c0_3, %c0_4] : memref<1x8x8x8xbf16, #tpu.memory_space<vmem>>, vector<1x8x8x8xbf16>
    %2 = arith.extf %1 : vector<1x8x8x8xbf16> to vector<1x8x8x8xf32>
    %3 = vector.extract_strided_slice %0 {offsets = [0, 0], sizes = [1, 8], strides = [1, 1]} : vector<2x8xf32> to vector<1x8xf32>
    %4 = vector.shape_cast %3 : vector<1x8xf32> to vector<1x1x1x8xf32>
    %5 = vector.broadcast %4 : vector<1x1x1x8xf32> to vector<1x8x8x8xf32>
    %6 = arith.mulf %2, %5 : vector<1x8x8x8xf32>
    %7 = vector.extract_strided_slice %0 {offsets = [1, 0], sizes = [1, 8], strides = [1, 1]} : vector<2x8xf32> to vector<1x8xf32>
    %8 = vector.shape_cast %7 : vector<1x8xf32> to vector<1x1x1x8xf32>
    %9 = vector.broadcast %8 : vector<1x1x1x8xf32> to vector<1x8x8x8xf32>
    %10 = arith.addf %6, %9 : vector<1x8x8x8xf32>
    %cst = arith.constant 0.000000e+00 : f32
    %11 = vector.broadcast %cst : f32 to vector<1x8x8x8xf32>
    %12 = arith.maximumf %10, %11 : vector<1x8x8x8xf32>
    %13 = arith.truncf %12 : vector<1x8x8x8xf32> to vector<1x8x8x8xbf16>
    %cst_5 = arith.constant 0.000000e+00 : bf16
    %14 = vector.broadcast %cst_5 : bf16 to vector<1x1x8x8xbf16>
    %15 = tpu.concatenate %14, %13, %14 in 1 : vector<1x1x8x8xbf16>, vector<1x8x8x8xbf16>, vector<1x1x8x8xbf16> -> vector<1x10x8x8xbf16>
    %cst_6 = arith.constant 0.000000e+00 : bf16
    %16 = vector.broadcast %cst_6 : bf16 to vector<1x10x1x8xbf16>
    %17 = tpu.concatenate %16, %15, %16 in 2 : vector<1x10x1x8xbf16>, vector<1x10x8x8xbf16>, vector<1x10x1x8xbf16> -> vector<1x10x10x8xbf16>
    %18 = vector.extract_strided_slice %17 {offsets = [0, 0, 0, 0], sizes = [1, 10, 8, 8], strides = [1, 1, 1, 1]} : vector<1x10x10x8xbf16> to vector<1x10x8x8xbf16>
    %19 = vector.extract_strided_slice %17 {offsets = [0, 0, 1, 0], sizes = [1, 10, 8, 8], strides = [1, 1, 1, 1]} : vector<1x10x10x8xbf16> to vector<1x10x8x8xbf16>
    %20 = vector.extract_strided_slice %17 {offsets = [0, 0, 2, 0], sizes = [1, 10, 8, 8], strides = [1, 1, 1, 1]} : vector<1x10x10x8xbf16> to vector<1x10x8x8xbf16>
    %21 = vector.extract_strided_slice %18 {offsets = [0, 0, 0, 0], sizes = [1, 8, 8, 8], strides = [1, 1, 1, 1]} : vector<1x10x8x8xbf16> to vector<1x8x8x8xbf16>
    %22 = vector.extract_strided_slice %19 {offsets = [0, 0, 0, 0], sizes = [1, 8, 8, 8], strides = [1, 1, 1, 1]} : vector<1x10x8x8xbf16> to vector<1x8x8x8xbf16>
    %23 = vector.extract_strided_slice %20 {offsets = [0, 0, 0, 0], sizes = [1, 8, 8, 8], strides = [1, 1, 1, 1]} : vector<1x10x8x8xbf16> to vector<1x8x8x8xbf16>
    %24 = vector.extract_strided_slice %18 {offsets = [0, 1, 0, 0], sizes = [1, 8, 8, 8], strides = [1, 1, 1, 1]} : vector<1x10x8x8xbf16> to vector<1x8x8x8xbf16>
    %25 = vector.extract_strided_slice %19 {offsets = [0, 1, 0, 0], sizes = [1, 8, 8, 8], strides = [1, 1, 1, 1]} : vector<1x10x8x8xbf16> to vector<1x8x8x8xbf16>
    %26 = vector.extract_strided_slice %20 {offsets = [0, 1, 0, 0], sizes = [1, 8, 8, 8], strides = [1, 1, 1, 1]} : vector<1x10x8x8xbf16> to vector<1x8x8x8xbf16>
    %27 = vector.extract_strided_slice %18 {offsets = [0, 2, 0, 0], sizes = [1, 8, 8, 8], strides = [1, 1, 1, 1]} : vector<1x10x8x8xbf16> to vector<1x8x8x8xbf16>
    %28 = vector.extract_strided_slice %19 {offsets = [0, 2, 0, 0], sizes = [1, 8, 8, 8], strides = [1, 1, 1, 1]} : vector<1x10x8x8xbf16> to vector<1x8x8x8xbf16>
    %29 = vector.extract_strided_slice %20 {offsets = [0, 2, 0, 0], sizes = [1, 8, 8, 8], strides = [1, 1, 1, 1]} : vector<1x10x8x8xbf16> to vector<1x8x8x8xbf16>
    %30 = tpu.concatenate %21, %22, %23, %24, %25, %26, %27, %28, %29 in 3 : vector<1x8x8x8xbf16>, vector<1x8x8x8xbf16>, vector<1x8x8x8xbf16>, vector<1x8x8x8xbf16>, vector<1x8x8x8xbf16>, vector<1x8x8x8xbf16>, vector<1x8x8x8xbf16>, vector<1x8x8x8xbf16>, vector<1x8x8x8xbf16> -> vector<1x8x8x72xbf16>
    %31 = vector.shape_cast %30 : vector<1x8x8x72xbf16> to vector<64x72xbf16>
    %c0_7 = arith.constant 0 : index
    %c0_8 = arith.constant 0 : index
    %32 = vector.load %arg3[%c0_7, %c0_8] : memref<72x8xbf16, #tpu.memory_space<vmem>>, vector<72x8xbf16>
    %cst_9 = arith.constant dense<0.000000e+00> : vector<64x8xf32>
    %33 = tpu.matmul %31, %32, %cst_9 {dimension_numbers = #tpu.dot_dimension_numbers<[1], [0], [0], [1], [0, 0, 1, 1], [], []>} : vector<64x72xbf16>, vector<72x8xbf16>, vector<64x8xf32> -> vector<64x8xf32>
    %34 = vector.shape_cast %33 : vector<64x8xf32> to vector<1x8x8x8xf32>
    %c0_10 = arith.constant 0 : index
    %c0_11 = arith.constant 0 : index
    %c0_12 = arith.constant 0 : index
    %c0_13 = arith.constant 0 : index
    %35 = vector.load %arg4[%c0_10, %c0_11, %c0_12, %c0_13] : memref<1x8x8x8xf32, #tpu.memory_space<vmem>>, vector<1x8x8x8xf32>
    tpu.vector_store %arg4[%c0_10, %c0_11, %c0_12, %c0_13], %34 {strides = array<i32>} : memref<1x8x8x8xf32, #tpu.memory_space<vmem>>, vector<1x8x8x8xf32>,
    %cst_14 = arith.constant dense<0.000000e+00> : vector<8xf32>
    %36 = vector.multi_reduction <add>, %33, %cst_14 [0] : vector<64x8xf32> to vector<8xf32>
    %37 = vector.shape_cast %36 : vector<8xf32> to vector<1x8xf32>
    %38 = arith.mulf %33, %33 : vector<64x8xf32>
    %cst_15 = arith.constant dense<0.000000e+00> : vector<8xf32>
    %39 = vector.multi_reduction <add>, %38, %cst_15 [0] : vector<64x8xf32> to vector<8xf32>
    %40 = vector.shape_cast %39 : vector<8xf32> to vector<1x8xf32>
    %41 = tpu.concatenate %37, %40 in 0 : vector<1x8xf32>, vector<1x8xf32> -> vector<2x8xf32>
    %42 = vector.shape_cast %41 : vector<2x8xf32> to vector<1x2x8xf32>
    %c0_16 = arith.constant 0 : index
    %c0_17 = arith.constant 0 : index
    %c0_18 = arith.constant 0 : index
    %43 = vector.load %arg5[%c0_16, %c0_17, %c0_18] : memref<1x2x8xf32, #tpu.memory_space<vmem>>, vector<1x2x8xf32>
    tpu.vector_store %arg5[%c0_16, %c0_17, %c0_18], %42 {strides = array<i32>} : memref<1x2x8xf32, #tpu.memory_space<vmem>>, vector<1x2x8xf32>,
    return
  }
  func.func @transform_0(%arg0: i32) -> (i32, i32, i32, i32) {
    %c0_i32 = arith.constant 0 : i32
    %c0_i32_0 = arith.constant 0 : i32
    %c0_i32_1 = arith.constant 0 : i32
    %c0_i32_2 = arith.constant 0 : i32
    return %arg0, %c0_i32, %c0_i32_0, %c0_i32_1 : i32, i32, i32, i32
  }
  func.func @transform_1(%arg0: i32) -> (i32, i32) {
    %c0_i32 = arith.constant 0 : i32
    %c0_i32_0 = arith.constant 0 : i32
    %c0_i32_1 = arith.constant 0 : i32
    return %c0_i32, %c0_i32_0 : i32, i32
  }
  func.func @transform_2(%arg0: i32) -> (i32, i32) {
    %c0_i32 = arith.constant 0 : i32
    %c0_i32_0 = arith.constant 0 : i32
    %c0_i32_1 = arith.constant 0 : i32
    return %c0_i32, %c0_i32_0 : i32, i32
  }
  func.func @transform_3(%arg0: i32) -> (i32, i32, i32, i32) {
    %c0_i32 = arith.constant 0 : i32
    %c0_i32_0 = arith.constant 0 : i32
    %c0_i32_1 = arith.constant 0 : i32
    %c0_i32_2 = arith.constant 0 : i32
    return %arg0, %c0_i32, %c0_i32_0, %c0_i32_1 : i32, i32, i32, i32
  }
  func.func @transform_4(%arg0: i32) -> (i32, i32, i32) {
    %c0_i32 = arith.constant 0 : i32
    %c0_i32_0 = arith.constant 0 : i32
    %c0_i32_1 = arith.constant 0 : i32
    return %arg0, %c0_i32, %c0_i32_0 : i32, i32, i32
  }
}

</mosaic_0001>

<bundles_post_ra>
// kernel: down_forward.5
= control target key start
LH: loop header
LB: loop body
LE: loop exit
PB: predicated region body
PF: predicated region fallthrough
CT: control target
= control target key end

     0   :  { %s287_s9 = smov 0   ;;  %s315_s0 = inlined_call_operand.vmem [shape: f32[2,8,8,8], index: 0, kind: input, shape index: {}]   ;;  %s316_s1 = inlined_call_operand.vmem [shape: f32[2,8], index: 1, kind: input, shape index: {}]   ;;  %s317_s2 = inlined_call_operand.vmem [shape: f32[2,8,8,8], index: 2, kind: output, shape index: {}]  }
   0x1 LB: > { %s243_s10 = sadd.s32 4294967295, %s270_s9   ;;  %p247_p0 = scmp.ge.s32.totalorder %s270_s9, 1  ;;  %s270_s9 = sphi %s287_s9, %s12_s9  }
   0x2   : > { %p112_p1 = scmp.lt.s32.totalorder %s270_s9, 3 }
   0x4   : > { %p113_p2 = pnand %p247_p0, %p112_p1 }
   0x5   : > { %p134_p3 = scmp.lt.s32.totalorder (!%p113_p2), %s243_s10, 1 }
   0x6   : > { %116 = sbr.rel (%p113_p2) target bundleno = 29 (0x1d), region = 28 }
   0xb   : > { %v144_v0 = vld [vmem:[%s316_s1] sm:$0x3]  ;;  %s319_s10 = smov (!%p134_p3, %s243_s10), 1  ;;  %vm179_vm0 = vcmask 64512  }
   0xc   : > { %v153_v1 = vperm.slane %v144_v0, 0  ;;  %s254_s13 = sshll.u32 %s319_s10, 6  ;;  %v162_v2 = vperm.slane %v144_v0, 1 }
   0xd   : > { %s138_s16 = scalar_lea.vmem %s315_s0, %s254_s13  ;;  %s143_s19 = scalar_lea.vmem %s317_s2, %s254_s13 }
   0xe   : > { %v145_v3 = vld [vmem:[%s138_s16] sm:$0xff]  ;;  %v146_v4 = vld [vmem:[%s138_s16 + $0x8] sm:$0xff]  ;;  %v147_v5 = vld [vmem:[%s138_s16 + $0x10] sm:$0xff] }
   0xf   : > { %v154_v6 = vmul.f32 %v153_v1, %v145_v3  ;;  %v155_v7 = vmul.f32 %v153_v1, %v146_v4  ;;  %v156_v8 = vmul.f32 %v153_v1, %v147_v5  ;;  %v148_v9 = vld [vmem:[%s138_s16 + $0x18] sm:$0xff]  ;;  %v149_v10 = vld [vmem:[%s138_s16 + $0x20] sm:$0xff]  ;;  %v150_v11 = vld [vmem:[%s138_s16 + $0x28] sm:$0xff] }
  0x10   : > { %v157_v12 = vmul.f32 %v153_v1, %v148_v9  ;;  %v158_v13 = vmul.f32 %v153_v1, %v149_v10  ;;  %v159_v14 = vmul.f32 %v153_v1, %v150_v11  ;;  %v151_v15 = vld [vmem:[%s138_s16 + $0x30] sm:$0xff]  ;;  %v152_v16 = vld [vmem:[%s138_s16 + $0x38] sm:$0xff] }
  0x11   : > { %v163_v17 = vadd.f32 %v162_v2, %v154_v6  ;;  %v164_v18 = vadd.f32 %v162_v2, %v155_v7  ;;  %v165_v19 = vadd.f32 %v162_v2, %v156_v8  ;;  %v160_v20 = vmul.f32 %v153_v1, %v151_v15 }
  0x12   : > { %v166_v21 = vadd.f32 %v162_v2, %v157_v12  ;;  %v167_v22 = vadd.f32 %v162_v2, %v158_v13  ;;  %v168_v23 = vadd.f32 %v162_v2, %v159_v14  ;;  %v161_v24 = vmul.f32 %v153_v1, %v152_v16 }
  0x13   : > { %v171_v25 = vmax.f32 %v163_v17, 0.0  ;;  %v172_v26 = vmax.f32 %v164_v18, 0.0  ;;  %v173_v27 = vmax.f32 %v165_v19, 0.0  ;;  %v169_v28 = vadd.f32 %v162_v2, %v160_v20 }
  0x14   : > { %v174_v29 = vmax.f32 %v166_v21, 0.0  ;;  %v170_v30 = vadd.f32 %v162_v2, %v161_v24  ;;  %v175_v31 = vmax.f32 %v167_v22, 0.0  ;;  %v176_v32 = vmax.f32 %v168_v23, 0.0 }
  0x15   : > { %180 = vst.msk [vmem:[%s143_s19] sm:$0xff] %vm179_vm0, %v171_v25  ;;  %v177_v33 = vmax.f32 %v169_v28, 0.0 }
  0x16   : > { %181 = vst.msk [vmem:[%s143_s19 + $0x8] sm:$0xff] %vm179_vm0, %v172_v26  ;;  %v178_v34 = vmax.f32 %v170_v30, 0.0 }
  0x17   : > { %182 = vst.msk [vmem:[%s143_s19 + $0x10] sm:$0xff] %vm179_vm0, %v173_v27 }
  0x18   : > { %183 = vst.msk [vmem:[%s143_s19 + $0x18] sm:$0xff] %vm179_vm0, %v174_v29 }
  0x19   : > { %184 = vst.msk [vmem:[%s143_s19 + $0x20] sm:$0xff] %vm179_vm0, %v175_v31 }
  0x1a   : > { %185 = vst.msk [vmem:[%s143_s19 + $0x28] sm:$0xff] %vm179_vm0, %v176_v32 }
  0x1b   : > { %186 = vst.msk [vmem:[%s143_s19 + $0x30] sm:$0xff] %vm179_vm0, %v177_v33 }
  0x1c   : > { %187 = vst.msk [vmem:[%s143_s19 + $0x38] sm:$0xff] %vm179_vm0, %v178_v34 }
  0x1d PF: > { %s12_s9 = sadd.s32 1, %s270_s9  }
  0x1e   : > { %p9_p4 = scmp.ge.s32.totalorder %s12_s9, 4  }
  0x20   :  { %11 = sbr.rel (!%p9_p4) target bundleno = 1 (0x1), region = 58 }

// kernel: down_forward.4
= control target key start
LH: loop header
LB: loop body
LE: loop exit
PB: predicated region body
PF: predicated region fallthrough
CT: control target
= control target key end

     0   :  { %s1083_s15 = smov 0   ;;  %s1506_s0 = inlined_call_operand.vmem [shape: bf16[2,8,8,8], index: 0, kind: input, shape index: {}]   ;;  %s1507_s1 = inlined_call_operand.vmem [shape: f32[2,8], index: 1, kind: input, shape index: {}]   ;;  %s1508_s2 = inlined_call_operand.vmem [shape: bf16[72,8], index: 2, kind: input, shape index: {}]   ;;  %s1509_s3 = inlined_call_operand.vmem [shape: f32[2,8,8,8], index: 3, kind: output, shape index: {0}]   ;;  %s1510_s4 = inlined_call_operand.vmem [shape: f32[2,2,8], index: 4, kind: output, shape index: {1}]  }
   0x1 LB: > { %s952_s16 = sadd.s32 4294967295, %s1047_s15   ;;  %p956_p0 = scmp.ge.s32.totalorder %s1047_s15, 1  ;;  %s1047_s15 = sphi %s1083_s15, %s15_s15  }
   0x2   : > { %p165_p1 = scmp.lt.s32.totalorder %s1047_s15, 3 }
   0x4   : > { %p166_p2 = pnand %p956_p0, %p165_p1 }
   0x5   : > { %p195_p3 = scmp.lt.s32.totalorder (!%p166_p2), %s952_s16, 1  ;;  %s1050_s23 = smov (!%p166_p2), 16  }
   0x6   : > { %169 = sbr.rel (%p166_p2) target bundleno = 472 (0x1d8), region = 32  ;;  %s1051_s24 = smov (!%p166_p2), 8  }
   0x7   : > { %s1052_s25 = smov (!%p166_p2), 24   ;;  %s1053_s26 = smov (!%p166_p2), 32  }
   0x8   : > { %s1054_s27 = smov (!%p166_p2), 40   ;;  %s1055_s28 = smov (!%p166_p2), 48  }
   0x9   : > { %s1056_s29 = smov (!%p166_p2), 56   ;;  %s1057_s30 = smov (!%p166_p2), 64  }
   0xb   : > { %vm333_vm0 = vcmask 1040384   ;;  %vm334_vm1 = vsmask.f32 256  ;;  %vm345_vm2 = vcmask 1044480   ;;  %v1049_v0 = vmov 0   ;;  %s1516_s16 = smov (!%p195_p3, %s952_s16), 1 }
   0xc   : > { %v264_v1 = vrot.slane %v1049_v0, 7  ;;  %vm1092_vm3 = vmand %vm333_vm0, %vm334_vm1  ;;  %vm346_vm4 = vsmask.f32 4352  ;;  %v210_v5 = vld [vmem:[%s1507_s1] sm:$0x3]  ;;  %s984_s19 = sshll.u32 %s1516_s16, 5 }
   0xd   : > { %vm1096_vm5 = vmand %vm345_vm2, %vm346_vm4  ;;  %s1118_s22 = scalar_lea.vmem %s1506_s0, %s984_s19  ;;  %v1120_v10 = vperm.slane %v210_v5, 0  ;;  %v1126_v13 = vperm.slane %v210_v5, 1  ;;  %vm566_vm6 = vcmask 64512   ;;  %vm583_vm7 = vcmask 130048   ;;  %s985_s17 = sshll.u32 %s1516_s16, 6 }
   0xe   : > { %v336_v4 = vsel %vm1092_vm3, 0, %v264_v1  ;;  %v991_v12 = vld [vmem:[%s1118_s22] sm:$0xff]   ;;  %v1006_v14 = vld [vmem:[%s1118_s22 + $0x8] sm:$0xff]   ;;  %v1007_v15 = vld [vmem:[%s1118_s22 + $0x10] sm:$0xff]   ;;  %vm600_vm8 = vcmask 195584   ;;  %vm617_vm9 = vcmask 261120   ;;  %s1464_s20 = scalar_lea.vmem %s1509_s3, %s985_s17 }
   0xf   : > { %v1109_v6 = vsel %vm1096_vm5, %v336_v4, 0  ;;  %v993_v16 = vunpack.c.h.bf16 %v991_v12  ;;  %v992_v17 = vunpack.c.l.bf16 %v991_v12  ;;  %v997_v18 = vunpack.c.h.bf16 %v1006_v14  ;;  %s961_s21 = sshll.u32 %s1516_s16, 1 }
  0x10   : > { %v437_v7 = vrot.slane %v1109_v6, 1  ;;  %v358_v8 = vshrl.u32 %v1109_v6, 16  ;;  %v360_v9 = vshll.u32 %v1109_v6, 16  ;;  %v1000_v19 = vunpack.c.l.bf16 %v1007_v15 }
  0x11   : > { %v996_v21 = vunpack.c.l.bf16 %v1006_v14  ;;  %v229_v22 = vmul.f32 %v993_v16, %v1120_v10  ;;  %v228_v23 = vmul.f32 %v992_v17, %v1120_v10  ;;  %v231_v24 = vmul.f32 %v997_v18, %v1120_v10 }
  0x12   : > { %445 = vrot.lane.b32.xlu1 %v437_v7, %s1050_s23  ;;  %v362_v11 = vrot.slane %v360_v9, 1  ;;  %v232_v25 = vmul.f32 %v1000_v19, %v1120_v10  ;;  %v1001_v42 = vunpack.c.h.bf16 %v1007_v15  ;;  %v1182_v19 = vld [vmem:[%s1118_s22 + $0x18] sm:$0xff]   ;;  %vm771_vm10 = vcmask 1043456  }
  0x13   : > { %v230_v26 = vmul.f32 %v996_v21, %v1120_v10  ;;  %v238_v27 = vadd.f32 %v1126_v13, %v229_v22  ;;  %v237_v28 = vadd.f32 %v1126_v13, %v228_v23  ;;  %v240_v29 = vadd.f32 %v1126_v13, %v231_v24 }
  0x14   : > { %v1130_v20 = vor.u32 %v362_v11, %v358_v8  ;;  %v241_v30 = vadd.f32 %v1126_v13, %v232_v25  ;;  %v233_v60 = vmul.f32 %v1001_v42, %v1120_v10  ;;  %vm634_vm11 = vcmask 326656  }
  0x15   : > { %v239_v31 = vadd.f32 %v1126_v13, %v230_v26  ;;  %v246_v32 = vmax.f32 %v238_v27, 0.0  ;;  %v245_v33 = vmax.f32 %v237_v28, 0.0  ;;  %v248_v34 = vmax.f32 %v240_v29, 0.0 }
  0x16   : > { %413 = vrot.lane.b32.xlu0 %v1130_v20, %s1051_s24  ;;  %v249_v35 = vmax.f32 %v241_v30, 0.0  ;;  %v242_v16 = vadd.f32 %v1126_v13, %v233_v60  ;;  %v1004_v26 = vunpack.c.l.bf16 %v1182_v19  ;;  %vm668_vm12 = vcmask 457728  }
  0x17   : > { %v247_v36 = vmax.f32 %v239_v31, 0.0  ;;  %v254_v37 = vpack.c.bf16 %v246_v32, %v246_v32  ;;  %v253_v38 = vpack.c.bf16 %v245_v33, %v245_v33  ;;  %v256_v39 = vpack.c.bf16 %v248_v34, %v248_v34 }
  0x18   : > { %v257_v40 = vpack.c.bf16 %v249_v35, %v249_v35  ;;  %v250_v25 = vmax.f32 %v242_v16, 0.0  ;;  %v234_v33 = vmul.f32 %v1004_v26, %v1120_v10  ;;  %vm651_vm13 = vcmask 392192  }
  0x19   : > { %v255_v41 = vpack.c.bf16 %v247_v36, %v247_v36  ;;  %v276_v43 = vshrl.u32 %v254_v37, 16  ;;  %v279_v44 = vshll.u32 %v254_v37, 16  ;;  %v269_v45 = vshrl.u32 %v253_v38, 16 }
  0x1a   : > { %v272_v46 = vshll.u32 %v253_v38, 16  ;;  %v290_v47 = vshrl.u32 %v256_v39, 16  ;;  %v293_v48 = vshll.u32 %v256_v39, 16  ;;  %v297_v49 = vshrl.u32 %v257_v40, 16 }
  0x1b   : > { %v300_v50 = vshll.u32 %v257_v40, 16  ;;  %v278_v51 = vrot.slane %v276_v43, 7  ;;  %v271_v52 = vrot.slane %v269_v45, 7  ;;  %v283_v53 = vshrl.u32 %v255_v41, 16 }
  0x1c   : > { %v292_v54 = vrot.slane %v290_v47, 7  ;;  %v299_v55 = vrot.slane %v297_v49, 7  ;;  %v286_v0 = vshll.u32 %v255_v41, 16  ;;  %v258_v32 = vpack.c.bf16 %v250_v25, %v250_v25 }
  0x1d   : > { %v281_v56 = vor.u32 %v279_v44, %v278_v51  ;;  %v274_v57 = vor.u32 %v272_v46, %v271_v52  ;;  %v285_v63 = vrot.slane %v283_v53, 7  ;;  %v243_v40 = vadd.f32 %v1126_v13, %v234_v33 }
  0x1e   : > { %v295_v58 = vor.u32 %v293_v48, %v292_v54  ;;  %v302_v59 = vor.u32 %v300_v50, %v299_v55  ;;  %v304_v39 = vshrl.u32 %v258_v32, 16  ;;  %v307_v47 = vshll.u32 %v258_v32, 16 }
  0x1f   : > { %v338_v61 = vsel %vm1092_vm3, 0, %v281_v56  ;;  %v337_v62 = vsel %vm1092_vm3, 0, %v274_v57  ;;  %v288_v15 = vor.u32 %v286_v0, %v285_v63  ;;  %v251_v48 = vmax.f32 %v243_v40, 0.0 }
  0x20   : > { %v1151_v1 = vsel %vm1096_vm5, %v338_v61, 0  ;;  %v1155_v4 = vsel %vm1096_vm5, %v337_v62, 0  ;;  %v340_v5 = vsel %vm1092_vm3, 0, %v295_v58  ;;  %v341_v8 = vsel %vm1092_vm3, 0, %v302_v59 }
  0x21   : > { %464 = vrot.lane.b32.xlu1 %v1151_v1, %s1052_s25  ;;  %462 = vrot.lane.b32.xlu0 %v1155_v4, %s1052_s25  ;;  %v1167_v9 = vsel %vm1096_vm5, %v340_v5, 0  ;;  %v1174_v12 = vsel %vm1096_vm5, %v341_v8, 0  ;;  %v438_v22 = vrot.slane %v1155_v4, 1  ;;  %v367_v23 = vshll.u32 %v1155_v4, 16 }
  0x22   : > { %v1170_v11 = vrot.slane %v1167_v9, 1  ;;  %v388_v14 = vshll.u32 %v1167_v9, 16  ;;  %v386_v17 = vshrl.u32 %v1167_v9, 16  ;;  %v1185_v21 = vrot.slane %v1174_v12, 1 }
  0x23   : > { %v339_v24 = vsel %vm1092_vm3, 0, %v288_v15  ;;  %v395_v28 = vshll.u32 %v1174_v12, 16  ;;  %v365_v29 = vshrl.u32 %v1155_v4, 16  ;;  %v369_v30 = vrot.slane %v367_v23, 1 }
  0x24   : > { %453 = vrot.lane.b32.xlu2 %v1170_v11, %s1050_s23  ;;  %v390_v18 = vrot.slane %v388_v14, 1  ;;  %v1201_v31 = vsel %vm1096_vm5, %v339_v24, 0  ;;  %v393_v34 = vshrl.u32 %v1174_v12, 16  ;;  %v374_v38 = vshll.u32 %v1151_v1, 16 }
  0x25   : > { %v397_v35 = vrot.slane %v395_v28, 1  ;;  %v370_v36 = vor.u32 %v369_v30, %v365_v29  ;;  %v381_v37 = vshll.u32 %v1201_v31, 16  ;;  %v379_v42 = vshrl.u32 %v1201_v31, 16 }
  0x26   : > { %v1192_v27 = vor.u32 %v390_v18, %v386_v17  ;;  %v372_v44 = vshrl.u32 %v1151_v1, 16  ;;  %v376_v45 = vrot.slane %v374_v38, 1  ;;  %v306_v46 = vrot.slane %v304_v39, 7 }
  0x27   : > { %v1210_v41 = vor.u32 %v397_v35, %v393_v34  ;;  %v383_v43 = vrot.slane %v381_v37, 1  ;;  %v259_v52 = vpack.c.bf16 %v251_v48, %v251_v48  ;;  %v440_v59 = vrot.slane %v1201_v31, 1 }
  0x28   : > { %v377_v50 = vor.u32 %v376_v45, %v372_v44  ;;  %v309_v51 = vor.u32 %v307_v47, %v306_v46  ;;  %v439_v60 = vrot.slane %v1151_v1, 1  ;;  %v1005_v18 = vunpack.c.h.bf16 %v1182_v19 }
  0x29   : > { %455 = vrot.lane.b32.xlu0 %v1185_v21, %s1050_s23  ;;  %447 = vrot.lane.b32.xlu1 %v438_v22, %s1050_s23  ;;  %v384_v49 = vor.u32 %v383_v43, %v379_v42  ;;  %v311_v54 = vshrl.u32 %v259_v52, 16  ;;  %v314_v57 = vshll.u32 %v259_v52, 16  ;;  %vm685_vm14 = vcmask 523264  }
  0x2a   : > { %v342_v53 = vsel %vm1092_vm3, 0, %v309_v51  ;;  %v235_v23 = vmul.f32 %v1005_v18, %v1120_v10  ;;  %vm758_vm15 = vcmask 588800   ;;  %vm864_vm1 = vcmask 58368  }
  0x2b   : > { %v1225_v55 = vsel %vm1096_vm5, %v342_v53, 0  ;;  %v313_v56 = vrot.slane %v311_v54, 7 }
  0x2c   : > { %421 = vrot.lane.b32.xlu2 %v1192_v27, %s1051_s24  ;;  %v402_v61 = vshll.u32 %v1225_v55, 16  ;;  %v400_v63 = vshrl.u32 %v1225_v55, 16  ;;  %v244_v25 = vadd.f32 %v1126_v13, %v235_v23 }
  0x2d   : > { %v316_v58 = vor.u32 %v314_v57, %v313_v56 }
  0x2e   : > { %v404_v0 = vrot.slane %v402_v61, 1  ;;  %v252_v19 = vmax.f32 %v244_v25, 0.0 }
  0x2f   : > { %v343_v62 = vsel %vm1092_vm3, 0, %v316_v58 }
  0x30   : > { %v1242_v5 = vsel %vm1096_vm5, %v343_v62, 0  ;;  %v405_v8 = vor.u32 %v404_v0, %v400_v63  ;;  %v260_v26 = vpack.c.bf16 %v252_v19, %v252_v19 }
  0x31   : > { %485 = vrot.lane.b32.xlu1 %v370_v36, %s1053_s26  ;;  %415 = vrot.lane.b32.xlu0 %v370_v36, %s1051_s24  ;;  %v409_v14 = vshll.u32 %v1242_v5, 16  ;;  %v407_v15 = vshrl.u32 %v1242_v5, 16  ;;  %v444_v24 = vrot.slane %v1242_v5, 1 }
  0x32   : > { %v318_v10 = vshrl.u32 %v260_v26, 16  ;;  %v321_v29 = vshll.u32 %v260_v26, 16 }
  0x33   : > { %v411_v16 = vrot.slane %v409_v14, 1 }
  0x34   : > { %423 = vrot.lane.b32.xlu2 %v1210_v41, %s1051_s24  ;;  %v320_v28 = vrot.slane %v318_v10, 7 }
  0x35   : > { %v412_v17 = vor.u32 %v411_v16, %v407_v15 }
  0x36   : > { %v323_v30 = vor.u32 %v321_v29, %v320_v28 }
  0x38   : > { %v344_v36 = vsel %vm1092_vm3, 0, %v323_v30  ;;  %v988_v30 = vld [vmem:[%s1508_s2 + $0x10] sm:$0xff] }
  0x39   : > { %419 = vrot.lane.b32.xlu1 %v384_v49, %s1051_s24  ;;  %417 = vrot.lane.b32.xlu0 %v377_v50, %s1051_s24  ;;  %v1300_v40 = vsel %vm1096_vm5, %v344_v36, 0 }
  0x3a   : > { %v481_v42 = vshll.u32 %v1300_v40, 16  ;;  %v479_v3 = vshrl.u32 %v1300_v40, 16  ;;  %v501_v62 = vrot.slane %v1300_v40, 1 }
  0x3c   : > { %487 = vrot.lane.b32.xlu2 %v377_v50, %s1053_s26  ;;  %v483_v46 = vrot.slane %v481_v42, 1 }
  0x3e   : > { %v484_v48 = vor.u32 %v483_v46, %v479_v3 }
  0x41   : > { %502 = vrot.lane.b32.xlu1 %v438_v22, %s1054_s27  ;;  %472 = vrot.lane.b32.xlu0 %v1225_v55, %s1052_s25  ;;  %v1264_v22 = vrot.slane %v1225_v55, 1 }
  0x44   : > { %470 = vrot.lane.b32.xlu2 %v1174_v12, %s1052_s25 }
  0x49   : > { %451 = vrot.lane.b32.xlu1 %v440_v59, %s1050_s23  ;;  %449 = vrot.lane.b32.xlu0 %v439_v60, %s1050_s23 }
  0x4c   : > { %504 = vrot.lane.b32.xlu2 %v439_v60, %s1054_s27 }
  0x51   : > { %518 = vrot.lane.b32.xlu1 %v1151_v1, %s1055_s28  ;;  %495 = vrot.lane.b32.xlu0 %v405_v8, %s1053_s26 }
  0x54   : > { %493 = vrot.lane.b32.xlu2 %v1210_v41, %s1053_s26 }
  0x59   : > { %427 = vrot.lane.b32.xlu1 %v412_v17, %s1051_s24  ;;  %425 = vrot.lane.b32.xlu0 %v405_v8, %s1051_s24  ;;  %s208_s24 = scalar_lea.vmem %s1510_s4, %s961_s21 }
  0x5c   : > { %520 = vrot.lane.b32.xlu2 %v1201_v31, %s1055_s28 }
  0x61   : > { %510 = vrot.lane.b32.xlu1 %v1185_v21, %s1054_s27  ;;  %468 = vrot.lane.b32.xlu0 %v1167_v9, %s1052_s25 }
  0x64   : > { %466 = vrot.lane.b32.xlu2 %v1201_v31, %s1052_s25 }
  0x69   : > { %536 = vrot.lane.b32.xlu1 %v384_v49, %s1056_s29  ;;  %534 = vrot.lane.b32.xlu0 %v377_v50, %s1056_s29 }
  0x6c   : > { %512 = vrot.lane.b32.xlu2 %v1264_v22, %s1054_s27 }
  0x71   : > { %489 = vrot.lane.b32.xlu1 %v384_v49, %s1053_s26  ;;  %459 = vrot.lane.b32.xlu0 %v444_v24, %s1050_s23 }
  0x74   : > { %457 = vrot.lane.b32.xlu2 %v1264_v22, %s1050_s23 }
  0x79   : > { %528 = vrot.lane.b32.xlu1 %v1242_v5, %s1055_s28  ;;  %526 = vrot.lane.b32.xlu0 %v1225_v55, %s1055_s28 }
  0x7c   : > { %491 = vrot.lane.b32.xlu2 %v1192_v27, %s1053_s26 }
  0x7e   : > { %v454_v13 = vpop.permute.xlu2 %453 }
  0x81   : > { %474 = vrot.lane.b32.xlu1 %v1242_v5, %s1052_s25  ;;  %552 = vrot.lane.b32.xlu0 %v440_v59, %s1057_s30 }
  0x84   : > { %v446_v32 = vpop.permute.xlu1 %445  ;;  %550 = vrot.lane.b32.xlu2 %v439_v60, %s1057_s30 }
  0x86   : > { %v422_v35 = vpop.permute.xlu2 %421 }
  0x87   : > { %v576_v38 = vsel %vm566_vm6, %v1167_v9, %v422_v35 }
  0x88   : > { %v414_v33 = vpop.permute.xlu0 %413  ;;  %v593_v39 = vsel %vm583_vm7, %v576_v38, %v454_v13 }
  0x89   : > { %v568_v34 = vsel %vm566_vm6, %v1109_v6, %v414_v33  ;;  %508 = vrot.lane.b32.xlu1 %v1170_v11, %s1054_s27  ;;  %506 = vrot.lane.b32.xlu0 %v440_v59, %s1054_s27 }
  0x8a   : > { %v585_v37 = vsel %vm583_vm7, %v568_v34, %v446_v32  ;;  %v987_v34 = vld [vmem:[%s1508_s2 + $0x8] sm:$0xff] }
  0x8c   : > { %476 = vrot.lane.b32.xlu2 %v1300_v40, %s1052_s25 }
  0x8e   : > { %v424_v2 = vpop.permute.xlu2 %423 }
  0x8f   : > { %v578_v49 = vsel %vm566_vm6, %v1174_v12, %v424_v2 }
  0x91   : > { %497 = vrot.lane.b32.xlu1 %v412_v17, %s1053_s26  ;;  %544 = vrot.lane.b32.xlu0 %v412_v17, %s1056_s29 }
  0x93   : > { %v465_v43 = vpop.permute.xlu1 %464  ;;  %v463_v44 = vpop.permute.xlu0 %462 }
  0x94   : > { %542 = vrot.lane.b32.xlu2 %v405_v8, %s1056_s29  ;;  %v602_v45 = vsel %vm600_vm8, %v585_v37, %v463_v44  ;;  %v986_v37 = vld [vmem:[%s1508_s2] sm:$0xff] }
  0x96   : > { %v488_v47 = vpop.permute.xlu2 %487 }
  0x99   : > { %524 = vrot.lane.b32.xlu1 %v1174_v12, %s1055_s28  ;;  %522 = vrot.lane.b32.xlu0 %v1167_v9, %s1055_s28 }
  0x9b   : > { %v456_v50 = vpop.permute.xlu0 %455  ;;  %v448_v51 = vpop.permute.xlu1 %447 }
  0x9c   : > { %499 = vrot.lane.b32.xlu2 %v484_v48, %s1053_s26  ;;  %v595_v52 = vsel %vm583_vm7, %v578_v49, %v456_v50 }
  0x9e   : > { %v471_v53 = vpop.permute.xlu2 %470 }
  0x9f   : > { %v610_v54 = vsel %vm600_vm8, %v593_v39, %v471_v53 }
  0xa1   : > { %514 = vrot.lane.b32.xlu1 %v444_v24, %s1054_s27  ;;  %560 = vrot.lane.b32.xlu0 %v444_v24, %s1057_s30 }
  0xa3   : > { %v486_v56 = vpop.permute.xlu1 %485  ;;  %v416_v57 = vpop.permute.xlu0 %415 }
  0xa4   : > { %558 = vrot.lane.b32.xlu2 %v1264_v22, %s1057_s30  ;;  %v1324_v9 = vsel %vm617_vm9, %v602_v45, %v486_v56  ;;  %v570_v12 = vsel %vm566_vm6, %v1155_v4, %v416_v57 }
  0xa5   : > { %v587_v58 = vsel %vm583_vm7, %v570_v12, %v448_v51 }
  0xa6   : > { %v1329_v59 = vpop.permute.xlu2 %504  ;;  %v604_v60 = vsel %vm600_vm8, %v587_v58, %v465_v43 }
  0xa7   : > { %v1333_v61 = vsel %vm617_vm9, %v604_v60, %v488_v47 }
  0xa9   : > { %540 = vrot.lane.b32.xlu1 %v1210_v41, %s1056_s29  ;;  %538 = vrot.lane.b32.xlu0 %v1192_v27, %s1056_s29 }
  0xab   : > { %v420_v63 = vpop.permute.xlu1 %419  ;;  %v418_v0 = vpop.permute.xlu0 %417 }
  0xac   : > { %516 = vrot.lane.b32.xlu2 %v501_v62, %s1054_s27  ;;  %v572_v16 = vsel %vm566_vm6, %v1151_v1, %v418_v0  ;;  %v710_v1 = vld [vmem:[%s1508_s2 + $0x20] sm:$0xf] }
  0xae   : > { %v494_v4 = vpop.permute.xlu2 %493 }
  0xaf   : > { %v1342_v8 = vsel %vm617_vm9, %v610_v54, %v494_v4 }
  0xb1   : > { %554 = vrot.lane.b32.xlu1 %v1170_v11, %s1057_s30  ;;  %532 = vrot.lane.b32.xlu0 %v1109_v6, %s1055_s28  ;;  %v574_v11 = vsel %vm566_vm6, %v1201_v31, %v420_v63  ;;  %v748_v31 = vunpack.c.l.b16 %v710_v1  ;;  %v989_v6 = vld [vmem:[%s1508_s2 + $0x18] sm:$0xff] }
  0xb3   : > { %v1348_v14 = vpop.permute.xlu1 %502  ;;  %v473_v41 = vpop.permute.xlu0 %472 }
  0xb4   : > { %v612_v15 = vsel %vm600_vm8, %v595_v52, %v473_v41  ;;  %530 = vrot.lane.b32.xlu2 %v1300_v40, %s1055_s28  ;;  %v636_v49 = vsel %vm634_vm11, %v1324_v9, %v1348_v14  ;;  %v638_v52 = vsel %vm634_vm11, %v1333_v61, %v1329_v59 }
  0xb6   : > { %v1353_v27 = vpop.permute.xlu2 %520 }
  0xb7   : > { %v655_v53 = vsel %vm651_vm13, %v638_v52, %v1353_v27 }
  0xb9   : > { %548 = vrot.lane.b32.xlu1 %v1130_v20, %s1056_s29  ;;  %546 = vrot.lane.b32.xlu0 %v484_v48, %s1056_s29 }
  0xbb   : > { %v452_v17 = vpop.permute.xlu1 %451  ;;  %v450_v18 = vpop.permute.xlu0 %449 }
  0xbc   : > { %v591_v22 = vsel %vm583_vm7, %v574_v11, %v452_v17  ;;  %v589_v23 = vsel %vm583_vm7, %v572_v16, %v450_v18  ;;  %556 = vrot.lane.b32.xlu2 %v1185_v21, %s1057_s30  ;;  %v753_v21 = vpack.c.b16 %v748_v31, %v748_v31 }
  0xbe   : > { %v467_v24 = vpop.permute.xlu2 %466  ;;  %v773_v13 = vsel %vm771_vm10, %v753_v21, 0 }
  0xbf   : > { %v1367_v20 = vsel %vm600_vm8, %v589_v23, %v467_v24  ;;  %778 = vmatpush.bf16.msra.mxu0 %v773_v13  ;;  %1010 = vmatpush.bf16.msra.mxu2 %v773_v13 }
  0xc0   : > { %1009 = vmatpush.bf16.msra.mxu1 %v773_v13  ;;  %1011 = vmatpush.bf16.msra.mxu3 %v773_v13 }
  0xc1   : > { %564 = vrot.lane.b32.xlu0 %v437_v7, %s1057_s30 }
  0xc3   : > { %v519_v25 = vpop.permute.xlu1 %518  ;;  %v496_v19 = vpop.permute.xlu0 %495  ;;  %779 = vmatpush.bf16.msra.mxu0 %v989_v6  ;;  %1013 = vmatpush.bf16.msra.mxu2 %v989_v6 }
  0xc4   : > { %v1376_v26 = vsel %vm617_vm9, %v612_v15, %v496_v19  ;;  %562 = vrot.lane.b32.xlu2 %v501_v62, %s1057_s30  ;;  %1012 = vmatpush.bf16.msra.mxu1 %v989_v6  ;;  %v653_v50 = vsel %vm651_vm13, %v636_v49, %v519_v25 }
  0xc5   : > { %1014 = vmatpush.bf16.msra.mxu3 %v989_v6 }
  0xc6   : > { %v1379_v10 = vpop.permute.xlu2 %512 }
  0xc7   : > { %780 = vmatpush.bf16.msra.mxu0 %v988_v30  ;;  %1016 = vmatpush.bf16.msra.mxu2 %v988_v30  ;;  %v646_v24 = vsel %vm634_vm11, %v1376_v26, %v1379_v10 }
  0xc8   : > { %1015 = vmatpush.bf16.msra.mxu1 %v988_v30 }
  0xc9   : > { %1017 = vmatpush.bf16.msra.mxu3 %v988_v30 }
  0xcb   : > { %v428_v7 = vpop.permute.xlu1 %427  ;;  %v426_v28 = vpop.permute.xlu0 %425  ;;  %781 = vmatpush.bf16.msra.mxu0 %v987_v34  ;;  %1019 = vmatpush.bf16.msra.mxu2 %v987_v34 }
  0xcc   : > { %v580_v29 = vsel %vm566_vm6, %v1225_v55, %v426_v28  ;;  %1018 = vmatpush.bf16.msra.mxu1 %v987_v34  ;;  %v582_v42 = vsel %vm566_vm6, %v1242_v5, %v428_v7 }
  0xcd   : > { %1020 = vmatpush.bf16.msra.mxu3 %v987_v34 }
  0xce   : > { %v458_v32 = vpop.permute.xlu2 %457 }
  0xcf   : > { %v597_v33 = vsel %vm583_vm7, %v580_v29, %v458_v32  ;;  %782 = vmatpush.bf16.msra.mxu0 %v986_v37  ;;  %1022 = vmatpush.bf16.msra.mxu2 %v986_v37 }
  0xd0   : > { %1021 = vmatpush.bf16.msra.mxu1 %v986_v37 }
  0xd1   : > { %1023 = vmatpush.bf16.msra.mxu3 %v986_v37 }
  0xd3   : > { %v511_v35 = vpop.permute.xlu1 %510  ;;  %v469_v36 = vpop.permute.xlu0 %468 }
  0xd4   : > { %v1394_v55 = vsel %vm600_vm8, %v591_v22, %v469_v36  ;;  %v644_v22 = vsel %vm634_vm11, %v1342_v8, %v511_v35 }
  0xd6   : > { %v1399_v38 = vpop.permute.xlu2 %491 }
  0xdb   : > { %v537_v39 = vpop.permute.xlu1 %536  ;;  %v535_v40 = vpop.permute.xlu0 %534 }
  0xdc   : > { %v670_v51 = vsel %vm668_vm12, %v653_v50, %v535_v40  ;;  %v672_v56 = vsel %vm668_vm12, %v655_v53, %v537_v39 }
  0xde   : > { %v551_v2 = vpop.permute.xlu2 %550 }
  0xdf   : > { %v687_v54 = vsel %vm685_vm14, %v670_v51, %v551_v2 }
  0xe0   : > { %v719_v60 = vunpack.c.l.b16 %v687_v54 }
  0xe3   : > { %v1403_v43 = vpop.permute.xlu1 %489  ;;  %v460_v44 = vpop.permute.xlu0 %459 }
  0xe4   : > { %v599_v45 = vsel %vm583_vm7, %v582_v42, %v460_v44  ;;  %v623_v39 = vsel %vm617_vm9, %v1367_v20, %v1403_v43 }
  0xe6   : > { %v477_v3 = vpop.permute.xlu2 %476 }
  0xe7   : > { %v616_v46 = vsel %vm600_vm8, %v599_v45, %v477_v3 }
  0xeb   : > { %v529_v47 = vpop.permute.xlu1 %528  ;;  %v527_v48 = vpop.permute.xlu0 %526 }
  0xec   : > { %v661_v23 = vsel %vm651_vm13, %v644_v22, %v527_v48  ;;  %v663_v31 = vsel %vm651_vm13, %v646_v24, %v529_v47 }
  0xee   : > { %v543_v5 = vpop.permute.xlu2 %542 }
  0xef   : > { %v678_v1 = vsel %vm668_vm12, %v661_v23, %v543_v5 }
  0xf3   : > { %v475_v57 = vpop.permute.xlu1 %474  ;;  %v553_v9 = vpop.permute.xlu0 %552 }
  0xf4   : > { %v614_v12 = vsel %vm600_vm8, %v597_v33, %v475_v57  ;;  %v689_v58 = vsel %vm685_vm14, %v672_v56, %v553_v9  ;;  %v625_v33 = vsel %vm617_vm9, %v1394_v55, %v1399_v38 }
  0xf5   : > { %v720_v62 = vunpack.c.l.b16 %v689_v58 }
  0xf6   : > { %v500_v63 = vpop.permute.xlu2 %499 }
  0xf7   : > { %v633_v0 = vsel %vm617_vm9, %v616_v46, %v500_v63  ;;  %v727_v59 = vpack.c.b16 %v720_v62, %v719_v60 }
  0xf9   : > { %978 = vmatmul.msk.bf16.vlgmr.msra.gmra.mxu0 %vm758_vm15, %v727_v59 }
  0xfb   : > { %v509_v61 = vpop.permute.xlu1 %508  ;;  %v507_v4 = vpop.permute.xlu0 %506 }
  0xfc   : > { %v642_v34 = vsel %vm634_vm11, %v625_v33, %v509_v61  ;;  %v640_v40 = vsel %vm634_vm11, %v623_v39, %v507_v4 }
  0xfe   : > { %v559_v14 = vpop.permute.xlu2 %558 }
  0xff   : > { %v695_v25 = vsel %vm685_vm14, %v678_v1, %v559_v14 }
 0x100   : > { %v723_v28 = vunpack.c.l.b16 %v695_v25 }
 0x103   : > { %v498_v41 = vpop.permute.xlu1 %497  ;;  %v545_v15 = vpop.permute.xlu0 %544 }
 0x104   : > { %v631_v27 = vsel %vm617_vm9, %v614_v12, %v498_v41  ;;  %v680_v21 = vsel %vm668_vm12, %v663_v31, %v545_v15 }
 0x106   : > { %v517_v11 = vpop.permute.xlu2 %516 }
 0x107   : > { %v650_v16 = vsel %vm634_vm11, %v633_v0, %v517_v11 }
 0x10b   : > { %v525_v17 = vpop.permute.xlu1 %524  ;;  %v523_v18 = vpop.permute.xlu0 %522 }
 0x10c   : > { %v659_v35 = vsel %vm651_vm13, %v642_v34, %v525_v17  ;;  %v657_v2 = vsel %vm651_vm13, %v640_v40, %v523_v18 }
 0x10e   : > { %v531_v19 = vpop.permute.xlu2 %530 }
 0x113   : > { %v515_v13 = vpop.permute.xlu1 %514  ;;  %v561_v6 = vpop.permute.xlu0 %560 }
 0x114   : > { %v648_v7 = vsel %vm634_vm11, %v631_v27, %v515_v13  ;;  %v697_v8 = vsel %vm685_vm14, %v680_v21, %v561_v6 }
 0x115   : > { %v724_v29 = vunpack.c.l.b16 %v697_v8  ;;  %v665_v30 = vsel %vm651_vm13, %v648_v7, %v531_v19 }
 0x116   : > { %v557_v37 = vpop.permute.xlu2 %556 }
 0x117   : > { %v729_v26 = vpack.c.b16 %v724_v29, %v723_v28 }
 0x119   : > { %980 = vmatmul.msk.bf16.vlgmr.msra.gmra.mxu2 %vm758_vm15, %v729_v26 }
 0x11b   : > { %v541_v10 = vpop.permute.xlu1 %540  ;;  %v539_v32 = vpop.permute.xlu0 %538 }
 0x11c   : > { %v676_v36 = vsel %vm668_vm12, %v659_v35, %v541_v10  ;;  %v674_v44 = vsel %vm668_vm12, %v657_v2, %v539_v32 }
 0x11d   : > { %v693_v42 = vsel %vm685_vm14, %v676_v36, %v557_v37 }
 0x11e   : > { %v722_v46 = vunpack.c.l.b16 %v693_v42  ;;  %v563_v20 = vpop.permute.xlu2 %562 }
 0x123   : > { %v555_v55 = vpop.permute.xlu1 %554  ;;  %v533_v38 = vpop.permute.xlu0 %532 }
 0x124   : > { %v691_v45 = vsel %vm685_vm14, %v674_v44, %v555_v55  ;;  %v667_v3 = vsel %vm651_vm13, %v650_v16, %v533_v38 }
 0x125   : > { %v721_v47 = vunpack.c.l.b16 %v691_v45 }
 0x127   : > { %v728_v48 = vpack.c.b16 %v722_v46, %v721_v47 }
 0x129   : > { %979 = vmatmul.msk.bf16.vlgmr.msra.gmra.mxu1 %vm758_vm15, %v728_v48 }
 0x12b   : > { %v549_v43 = vpop.permute.xlu1 %548  ;;  %v547_v49 = vpop.permute.xlu0 %546 }
 0x12c   : > { %v684_v50 = vsel %vm668_vm12, %v667_v3, %v549_v43  ;;  %v682_v5 = vsel %vm668_vm12, %v665_v30, %v547_v49 }
 0x12d   : > { %v699_v51 = vsel %vm685_vm14, %v682_v5, %v563_v20 }
 0x12e   : > { %v725_v54 = vunpack.c.l.b16 %v699_v51 }
 0x133   : > { %v565_v52 = vpop.permute.xlu0 %564 }
 0x134   : > { %v701_v53 = vsel %vm685_vm14, %v684_v50, %v565_v52 }
 0x135   : > { %v726_v56 = vunpack.c.l.b16 %v701_v53 }
 0x137   : > { %v730_v57 = vpack.c.b16 %v726_v56, %v725_v54 }
 0x139   : > { %981 = vmatmul.msk.bf16.vlgmr.msra.gmra.mxu3 %vm758_vm15, %v730_v57 }
 0x176   : > { %v784_v9 = vpop.f32.mrf.mxu0 }
 0x177   : > { %804 = vst.msk [vmem:[%s1464_s20] sm:$0xff] %vm566_vm6, %v784_v9  ;;  %v833_v59 = vmul.f32 %v784_v9, %v784_v9  ;;  %v812_v14 = vsel %vm566_vm6, %v784_v9, 0.0 }
 0x179   : > { %v841_v16 = vsel %vm566_vm6, %v833_v59, 0.0 }
 0x17e   : > { %v786_v12 = vpop.f32.mrf.mxu0 }
 0x17f   : > { %805 = vst.msk [vmem:[%s1464_s20 + $0x8] sm:$0xff] %vm566_vm6, %v786_v12  ;;  %v834_v0 = vmul.f32 %v786_v12, %v786_v12  ;;  %v813_v61 = vsel %vm566_vm6, %v786_v12, 0.0 }
 0x180   : > { %v814_v11 = vadd.f32 %v813_v61, %v812_v14 }
 0x181   : > { %v842_v41 = vsel %vm566_vm6, %v834_v0, 0.0 }
 0x182   : > { %v843_v22 = vadd.f32 %v842_v41, %v841_v16 }
 0x19c   : > { %v794_v58 = vpop.f32.mrf.mxu2 }
 0x19d   : > { %808 = vst.msk [vmem:[%s1464_s20 + $0x20] sm:$0xff] %vm566_vm6, %v794_v58  ;;  %v837_v25 = vmul.f32 %v794_v58, %v794_v58  ;;  %v819_v13 = vsel %vm566_vm6, %v794_v58, 0.0 }
 0x19f   : > { %v848_v7 = vsel %vm566_vm6, %v837_v25, 0.0 }
 0x1a4   : > { %v796_v60 = vpop.f32.mrf.mxu2 }
 0x1a5   : > { %809 = vst.msk [vmem:[%s1464_s20 + $0x28] sm:$0xff] %vm566_vm6, %v796_v60  ;;  %v838_v8 = vmul.f32 %v796_v60, %v796_v60  ;;  %v821_v30 = vsel %vm566_vm6, %v796_v60, 0.0 }
 0x1a6   : > { %v789_v62 = vpop.f32.mrf.mxu1 }
 0x1a7   : > { %806 = vst.msk [vmem:[%s1464_s20 + $0x10] sm:$0xff] %vm566_vm6, %v789_v62  ;;  %v835_v4 = vmul.f32 %v789_v62, %v789_v62  ;;  %v815_v15 = vsel %vm566_vm6, %v789_v62, 0.0  ;;  %v850_v32 = vsel %vm566_vm6, %v838_v8, 0.0 }
 0x1a8   : > { %v816_v23 = vadd.f32 %v815_v15, %v814_v11 }
 0x1a9   : > { %v844_v17 = vsel %vm566_vm6, %v835_v4, 0.0 }
 0x1aa   : > { %v845_v1 = vadd.f32 %v844_v17, %v843_v22 }
 0x1ae   : > { %v791_v63 = vpop.f32.mrf.mxu1 }
 0x1af   : > { %807 = vst.msk [vmem:[%s1464_s20 + $0x18] sm:$0xff] %vm566_vm6, %v791_v63  ;;  %v836_v27 = vmul.f32 %v791_v63, %v791_v63  ;;  %v817_v18 = vsel %vm566_vm6, %v791_v63, 0.0 }
 0x1b0   : > { %v818_v31 = vadd.f32 %v817_v18, %v816_v23 }
 0x1b1   : > { %v846_v24 = vsel %vm566_vm6, %v836_v27, 0.0 }
 0x1b2   : > { %v847_v19 = vadd.f32 %v846_v24, %v845_v1  ;;  %v820_v6 = vadd.f32 %v819_v13, %v818_v31 }
 0x1b4   : > { %v849_v29 = vadd.f32 %v848_v7, %v847_v19  ;;  %v822_v10 = vadd.f32 %v821_v30, %v820_v6 }
 0x1b6   : > { %v851_v35 = vadd.f32 %v850_v32, %v849_v29 }
 0x1bc   : > { %v799_v21 = vpop.f32.mrf.mxu3 }
 0x1bd   : > { %810 = vst.msk [vmem:[%s1464_s20 + $0x30] sm:$0xff] %vm566_vm6, %v799_v21  ;;  %v839_v28 = vmul.f32 %v799_v21, %v799_v21  ;;  %v823_v26 = vsel %vm566_vm6, %v799_v21, 0.0 }
 0x1be   : > { %v824_v34 = vadd.f32 %v823_v26, %v822_v10 }
 0x1bf   : > { %v852_v33 = vsel %vm566_vm6, %v839_v28, 0.0 }
 0x1c0   : > { %v853_v40 = vadd.f32 %v852_v33, %v851_v35 }
 0x1c4   : > { %v801_v36 = vpop.f32.mrf.mxu3 }
 0x1c5   : > { %811 = vst.msk [vmem:[%s1464_s20 + $0x38] sm:$0xff] %vm566_vm6, %v801_v36  ;;  %v825_v37 = vsel %vm566_vm6, %v801_v36, 0.0  ;;  %v840_v39 = vmul.f32 %v801_v36, %v801_v36 }
 0x1c6   : > { %v826_v2 = vadd.f32 %v825_v37, %v824_v34 }
 0x1c7   : > { %v854_v42 = vsel %vm566_vm6, %v840_v39, 0.0 }
 0x1c8   : > { %v827_v44 = vrot.slane %v826_v2, 4  ;;  %v855_v55 = vadd.f32 %v854_v42, %v853_v40 }
 0x1ca   : > { %v828_v38 = vadd.f32 %v827_v44, %v826_v2  ;;  %v856_v45 = vrot.slane %v855_v55, 4 }
 0x1cc   : > { %v829_v3 = vrot.slane %v828_v38, 2  ;;  %v857_v46 = vadd.f32 %v856_v45, %v855_v55 }
 0x1ce   : > { %v830_v47 = vadd.f32 %v829_v3, %v828_v38  ;;  %v858_v48 = vrot.slane %v857_v46, 2 }
 0x1d0   : > { %v831_v20 = vrot.slane %v830_v47, 1  ;;  %v859_v43 = vadd.f32 %v858_v48, %v857_v46 }
 0x1d2   : > { %v860_v49 = vrot.slane %v859_v43, 1  ;;  %v832_v50 = vadd.f32 %v831_v20, %v830_v47 }
 0x1d4   : > { %v861_v5 = vadd.f32 %v860_v49, %v859_v43 }
 0x1d6   : > { %v863_v51 = vsel %vm333_vm0, %v832_v50, %v861_v5 }
 0x1d7   : > { %865 = vst.msk [vmem:[%s208_s24] sm:$0x3] %vm864_vm1, %v863_v51 }
 0x1d8 PF: > { %s15_s15 = sadd.s32 1, %s1047_s15  }
 0x1d9   : > { %p12_p4 = scmp.ge.s32.totalorder %s15_s15, 4  }
 0x1db   :  { %14 = sbr.rel (!%p12_p4) target bundleno = 1 (0x1), region = 74 }

// kernel: down_forward.3
= control target key start
LH: loop header
LB: loop body
LE: loop exit
PB: predicated region body
PF: predicated region fallthrough
CT: control target
= control target key end

     0   :  { %s1099_s12 = smov 0   ;;  %s1527_s0 = inlined_call_operand.vmem [shape: f32[2,16,16,4], index: 0, kind: input, shape index: {}]   ;;  %s1528_s1 = inlined_call_operand.vmem [shape: bf16[36,8], index: 1, kind: input, shape index: {}]   ;;  %s1529_s2 = inlined_call_operand.vmem [shape: bf16[2,8,8,8], index: 2, kind: output, shape index: {0}]   ;;  %s1530_s3 = inlined_call_operand.vmem [shape: f32[2,2,8], index: 3, kind: output, shape index: {1}]  }
   0x1 LB: > { %s977_s13 = sadd.s32 4294967295, %s1068_s12   ;;  %p981_p0 = scmp.ge.s32.totalorder %s1068_s12, 1  ;;  %s1068_s12 = sphi %s1099_s12, %s14_s12  }
   0x2   : > { %p140_p1 = scmp.lt.s32.totalorder %s1068_s12, 3 }
   0x4   : > { %p141_p2 = pnand %p981_p0, %p140_p1 }
   0x5   : > { %p168_p3 = scmp.lt.s32.totalorder (!%p141_p2), %s977_s13, 1  ;;  %s1071_s18 = smov (!%p141_p2), 8  }
   0x6   : > { %144 = sbr.rel (%p141_p2) target bundleno = 471 (0x1d7), region = 28  ;;  %s1072_s19 = smov (!%p141_p2), 4  }
   0x7   : > { %s1073_s20 = smov (!%p141_p2), 12   ;;  %s1074_s21 = smov (!%p141_p2), 16  }
   0x8   : > { %s1075_s22 = smov (!%p141_p2), 20   ;;  %s1076_s23 = smov (!%p141_p2), 24  }
   0x9   : > { %s1077_s24 = smov (!%p141_p2), 28   ;;  %s1078_s25 = smov (!%p141_p2), 32  }
   0xb   : > { %vm350_vm0 = vcmask 1040384   ;;  %vm351_vm1 = vsmask.f32 256  ;;  %vm362_vm2 = vcmask 1044480   ;;  %v1070_v0 = vmov 0   ;;  %s1536_s13 = smov (!%p168_p3, %s977_s13), 1 }
   0xc   : > { %v281_v1 = vrot.slane %v1070_v0, 7  ;;  %vm1108_vm3 = vmand %vm350_vm0, %vm351_vm1  ;;  %vm363_vm4 = vsmask.f32 4352  ;;  %s1032_s14 = sshll.u32 %s1536_s13, 8  ;;  %vm583_vm6 = vcmask 31744   ;;  %vm600_vm7 = vcmask 64512  }
   0xd   : > { %vm1112_vm5 = vmand %vm362_vm2, %vm363_vm4  ;;  %s1131_s17 = scalar_lea.vmem %s1527_s0, %s1032_s14  ;;  %vm617_vm8 = vcmask 97280   ;;  %vm634_vm9 = vcmask 130048   ;;  %vm772_vm10 = vcmask 1041408   ;;  %vm651_vm11 = vcmask 162816   ;;  %s1033_s5 = sshll.u32 %s1536_s13, 5 }
   0xe   : > { %v353_v4 = vsel %vm1108_vm3, 0, %v281_v1  ;;  %v987_v10 = vld [vmem:[%s1131_s17 + $0x20] ss:$2 sm:$0xff]  ;;  %v995_v11 = vld [vmem:[%s1131_s17 + $0x21] ss:$2 sm:$0xff]  ;;  %vm685_vm12 = vcmask 228352   ;;  %s1485_s8 = scalar_lea.vmem %s1529_s2, %s1033_s5 }
   0xf   : > { %v1122_v5 = vsel %vm1112_vm5, %v353_v4, 0  ;;  %v1003_v12 = vld [vmem:[%s1131_s17 + $0x30] ss:$2 sm:$0xff]  ;;  %v1011_v13 = vld [vmem:[%s1131_s17 + $0x31] ss:$2 sm:$0xff]  ;;  %v247_v14 = vmax.f32 %v987_v10, %v995_v11  ;;  %vm668_vm13 = vcmask 195584  }
  0x10   : > { %v454_v6 = vrot.slane %v1122_v5, 1  ;;  %v375_v7 = vshrl.u32 %v1122_v5, 16  ;;  %v377_v8 = vshll.u32 %v1122_v5, 16  ;;  %v183_v15 = vld [vmem:[%s1131_s17] ss:$2 sm:$0xff]  ;;  %v255_v17 = vmax.f32 %v1003_v12, %v1011_v13  ;;  %s986_s9 = sshll.u32 %s1536_s13, 1 }
  0x11   : > { %v994_v18 = vld [vmem:[%s1131_s17 + $0x1] ss:$2 sm:$0xff]  ;;  %v1002_v19 = vld [vmem:[%s1131_s17 + $0x10] ss:$2 sm:$0xff]  ;;  %v1010_v20 = vld [vmem:[%s1131_s17 + $0x11] ss:$2 sm:$0xff]  ;;  %s181_s14 = scalar_lea.vmem %s1530_s3, %s986_s9 }
  0x12   : > { %462 = vrot.lane.b32.xlu1 %v454_v6, %s1071_s18  ;;  %v379_v9 = vrot.slane %v377_v8, 1  ;;  %v246_v21 = vmax.f32 %v183_v15, %v994_v18  ;;  %v254_v22 = vmax.f32 %v1002_v19, %v1010_v20  ;;  %v989_v23 = vld [vmem:[%s1131_s17 + $0x60] ss:$2 sm:$0xff]  ;;  %v997_v24 = vld [vmem:[%s1131_s17 + $0x61] ss:$2 sm:$0xff]  ;;  %v263_v26 = vmax.f32 %v247_v14, %v255_v17 }
  0x13   : > { %v1005_v25 = vld [vmem:[%s1131_s17 + $0x70] ss:$2 sm:$0xff]  ;;  %v1013_v27 = vld [vmem:[%s1131_s17 + $0x71] ss:$2 sm:$0xff]  ;;  %v249_v28 = vmax.f32 %v989_v23, %v997_v24  ;;  %v990_v29 = vld [vmem:[%s1131_s17 + $0x80] ss:$2 sm:$0xff] }
  0x14   : > { %v1141_v16 = vor.u32 %v379_v9, %v375_v7  ;;  %v998_v30 = vld [vmem:[%s1131_s17 + $0x81] ss:$2 sm:$0xff]  ;;  %v262_v31 = vmax.f32 %v246_v21, %v254_v22  ;;  %v257_v32 = vmax.f32 %v1005_v25, %v1013_v27  ;;  %v1006_v33 = vld [vmem:[%s1131_s17 + $0x90] ss:$2 sm:$0xff]  ;;  %v1014_v34 = vld [vmem:[%s1131_s17 + $0x91] ss:$2 sm:$0xff]  ;;  %v271_v37 = vpack.c.bf16 %v263_v26, %v263_v26 }
  0x15   : > { %v250_v35 = vmax.f32 %v990_v29, %v998_v30  ;;  %v988_v36 = vld [vmem:[%s1131_s17 + $0x40] ss:$2 sm:$0xff]  ;;  %v258_v38 = vmax.f32 %v1006_v33, %v1014_v34  ;;  %v996_v39 = vld [vmem:[%s1131_s17 + $0x41] ss:$2 sm:$0xff]  ;;  %v1004_v40 = vld [vmem:[%s1131_s17 + $0x50] ss:$2 sm:$0xff] }
  0x16   : > { %430 = vrot.lane.b32.xlu0 %v1141_v16, %s1072_s19  ;;  %v1012_v41 = vld [vmem:[%s1131_s17 + $0x51] ss:$2 sm:$0xff]  ;;  %v270_v42 = vpack.c.bf16 %v262_v31, %v262_v31  ;;  %v265_v43 = vmax.f32 %v249_v28, %v257_v32  ;;  %v248_v44 = vmax.f32 %v988_v36, %v996_v39  ;;  %v293_v46 = vshrl.u32 %v271_v37, 16  ;;  %v991_v8 = vld [vmem:[%s1131_s17 + $0xa0] ss:$2 sm:$0xff] }
  0x17   : > { %v256_v45 = vmax.f32 %v1004_v40, %v1012_v41  ;;  %v296_v47 = vshll.u32 %v271_v37, 16  ;;  %v266_v48 = vmax.f32 %v250_v35, %v258_v38  ;;  %v999_v13 = vld [vmem:[%s1131_s17 + $0xa1] ss:$2 sm:$0xff]  ;;  %v1007_v17 = vld [vmem:[%s1131_s17 + $0xb0] ss:$2 sm:$0xff]  ;;  %vm702_vm14 = vcmask 261120  }
  0x18   : > { %v286_v49 = vshrl.u32 %v270_v42, 16  ;;  %v289_v50 = vshll.u32 %v270_v42, 16  ;;  %v273_v51 = vpack.c.bf16 %v265_v43, %v265_v43  ;;  %v295_v53 = vrot.slane %v293_v46, 7  ;;  %v1015_v18 = vld [vmem:[%s1131_s17 + $0xb1] ss:$2 sm:$0xff] }
  0x19   : > { %v264_v52 = vmax.f32 %v248_v44, %v256_v45  ;;  %v274_v54 = vpack.c.bf16 %v266_v48, %v266_v48  ;;  %v251_v23 = vmax.f32 %v991_v8, %v999_v13  ;;  %v259_v27 = vmax.f32 %v1007_v17, %v1015_v18  ;;  %v992_v40 = vld [vmem:[%s1131_s17 + $0xc0] ss:$2 sm:$0xff]  ;;  %v1000_v42 = vld [vmem:[%s1131_s17 + $0xc1] ss:$2 sm:$0xff]  ;;  %v1008_v43 = vld [vmem:[%s1131_s17 + $0xd0] ss:$2 sm:$0xff] }
  0x1a   : > { %v288_v55 = vrot.slane %v286_v49, 7  ;;  %v307_v56 = vshrl.u32 %v273_v51, 16  ;;  %v310_v57 = vshll.u32 %v273_v51, 16  ;;  %v298_v59 = vor.u32 %v296_v47, %v295_v53  ;;  %v1016_v44 = vld [vmem:[%s1131_s17 + $0xd1] ss:$2 sm:$0xff] }
  0x1b   : > { %v272_v58 = vpack.c.bf16 %v264_v52, %v264_v52  ;;  %v314_v60 = vshrl.u32 %v274_v54, 16  ;;  %v317_v61 = vshll.u32 %v274_v54, 16  ;;  %v267_v34 = vmax.f32 %v251_v23, %v259_v27 }
  0x1c   : > { %v291_v62 = vor.u32 %v289_v50, %v288_v55  ;;  %v309_v63 = vrot.slane %v307_v56, 7  ;;  %v355_v1 = vsel %vm1108_vm3, 0, %v298_v59  ;;  %v252_v50 = vmax.f32 %v992_v40, %v1000_v42 }
  0x1d   : > { %v300_v0 = vshrl.u32 %v272_v58, 16  ;;  %v316_v4 = vrot.slane %v314_v60, 7  ;;  %v303_v7 = vshll.u32 %v272_v58, 16  ;;  %v1165_v9 = vsel %vm1112_vm5, %v355_v1, 0 }
  0x1e   : > { %v354_v10 = vsel %vm1108_vm3, 0, %v291_v62  ;;  %v312_v11 = vor.u32 %v310_v57, %v309_v63  ;;  %481 = vrot.lane.b32.xlu1 %v1165_v9, %s1073_s20  ;;  %v275_v41 = vpack.c.bf16 %v267_v34, %v267_v34  ;;  %v391_v49 = vshll.u32 %v1165_v9, 16  ;;  %v1017_v34 = vld [vmem:[%s1131_s17 + $0xf1] ss:$2 sm:$0xff] }
  0x1f   : > { %v302_v12 = vrot.slane %v300_v0, 7  ;;  %v1174_v14 = vsel %vm1112_vm5, %v354_v10, 0  ;;  %v319_v15 = vor.u32 %v317_v61, %v316_v4  ;;  %v260_v51 = vmax.f32 %v1008_v43, %v1016_v44 }
  0x20   : > { %479 = vrot.lane.b32.xlu0 %v1174_v14, %s1073_s20  ;;  %v357_v19 = vsel %vm1108_vm3, 0, %v312_v11  ;;  %v455_v28 = vrot.slane %v1174_v14, 1  ;;  %v384_v29 = vshll.u32 %v1174_v14, 16  ;;  %v382_v35 = vshrl.u32 %v1174_v14, 16 }
  0x21   : > { %v1184_v20 = vsel %vm1112_vm5, %v357_v19, 0  ;;  %v358_v21 = vsel %vm1108_vm3, 0, %v319_v15  ;;  %v305_v22 = vor.u32 %v303_v7, %v302_v12  ;;  %v321_v52 = vshrl.u32 %v275_v41, 16 }
  0x22   : > { %v1189_v24 = vrot.slane %v1184_v20, 1  ;;  %v1193_v25 = vsel %vm1112_vm5, %v358_v21, 0  ;;  %v405_v26 = vshll.u32 %v1184_v20, 16  ;;  %v403_v31 = vshrl.u32 %v1184_v20, 16 }
  0x23   : > { %v1201_v30 = vrot.slane %v1193_v25, 1  ;;  %v356_v33 = vsel %vm1108_vm3, 0, %v305_v22  ;;  %v386_v36 = vrot.slane %v384_v29, 1  ;;  %v412_v38 = vshll.u32 %v1193_v25, 16 }
  0x24   : > { %470 = vrot.lane.b32.xlu2 %v1189_v24, %s1071_s18  ;;  %v407_v32 = vrot.slane %v405_v26, 1  ;;  %v1215_v39 = vsel %vm1112_vm5, %v356_v33, 0  ;;  %v410_v47 = vshrl.u32 %v1193_v25, 16  ;;  %v389_v56 = vshrl.u32 %v1165_v9, 16  ;;  %v1009_v33 = vld [vmem:[%s1131_s17 + $0xf0] ss:$2 sm:$0xff] }
  0x25   : > { %v387_v45 = vor.u32 %v386_v36, %v382_v35  ;;  %v398_v46 = vshll.u32 %v1215_v39, 16  ;;  %v414_v48 = vrot.slane %v412_v38, 1  ;;  %v396_v53 = vshrl.u32 %v1215_v39, 16 }
  0x26   : > { %464 = vrot.lane.b32.xlu1 %v455_v28, %s1071_s18  ;;  %v1210_v37 = vor.u32 %v407_v32, %v403_v31  ;;  %v393_v57 = vrot.slane %v391_v49, 1  ;;  %v268_v58 = vmax.f32 %v252_v50, %v260_v51  ;;  %v323_v59 = vrot.slane %v321_v52, 7  ;;  %v993_v31 = vld [vmem:[%s1131_s17 + $0xe0] ss:$2 sm:$0xff]  ;;  %v1001_v32 = vld [vmem:[%s1131_s17 + $0xe1] ss:$2 sm:$0xff] }
  0x27   : > { %v400_v54 = vrot.slane %v398_v46, 1  ;;  %v1229_v55 = vor.u32 %v414_v48, %v410_v47  ;;  %v324_v60 = vshll.u32 %v275_v41, 16  ;;  %v1247_v12 = vrot.slane %v1215_v39, 1 }
  0x28   : > { %472 = vrot.lane.b32.xlu0 %v1201_v30, %s1071_s18  ;;  %v394_v62 = vor.u32 %v393_v57, %v389_v56  ;;  %v276_v63 = vpack.c.bf16 %v268_v58, %v268_v58  ;;  %v456_v13 = vrot.slane %v1165_v9, 1  ;;  %v253_v36 = vmax.f32 %v993_v31, %v1001_v32 }
  0x29   : > { %v401_v61 = vor.u32 %v400_v54, %v396_v53  ;;  %v326_v0 = vor.u32 %v324_v60, %v323_v59  ;;  %v261_v38 = vmax.f32 %v1009_v33, %v1017_v34  ;;  %vm759_vm15 = vcmask 293888  }
  0x2a   : > { %v328_v1 = vshrl.u32 %v276_v63, 16  ;;  %v331_v10 = vshll.u32 %v276_v63, 16  ;;  %vm813_vm1 = vcmask 60416   ;;  %vm874_vm2 = vcmask 58368  }
  0x2b   : > { %v359_v4 = vsel %vm1108_vm3, 0, %v326_v0  ;;  %v269_v40 = vmax.f32 %v253_v36, %v261_v38 }
  0x2c   : > { %438 = vrot.lane.b32.xlu2 %v1210_v37, %s1072_s19  ;;  %v1241_v7 = vsel %vm1112_vm5, %v359_v4, 0  ;;  %v330_v8 = vrot.slane %v328_v1, 7 }
  0x2d   : > { %v419_v15 = vshll.u32 %v1241_v7, 16  ;;  %v417_v18 = vshrl.u32 %v1241_v7, 16  ;;  %v1288_v29 = vrot.slane %v1241_v7, 1  ;;  %v277_v41 = vpack.c.bf16 %v269_v40, %v269_v40 }
  0x2e   : > { %502 = vrot.lane.b32.xlu1 %v387_v45, %s1074_s21  ;;  %v333_v11 = vor.u32 %v331_v10, %v330_v8 }
  0x2f   : > { %v421_v19 = vrot.slane %v419_v15, 1  ;;  %v335_v42 = vshrl.u32 %v277_v41, 16 }
  0x30   : > { %432 = vrot.lane.b32.xlu0 %v387_v45, %s1072_s19  ;;  %v360_v17 = vsel %vm1108_vm3, 0, %v333_v11  ;;  %v338_v45 = vshll.u32 %v277_v41, 16 }
  0x31   : > { %v1261_v21 = vsel %vm1112_vm5, %v360_v17, 0  ;;  %v1265_v23 = vor.u32 %v421_v19, %v417_v18  ;;  %v337_v44 = vrot.slane %v335_v42, 7 }
  0x32   : > { %v426_v22 = vshll.u32 %v1261_v21, 16  ;;  %v424_v26 = vshrl.u32 %v1261_v21, 16  ;;  %v461_v35 = vrot.slane %v1261_v21, 1 }
  0x33   : > { %v340_v46 = vor.u32 %v338_v45, %v337_v44 }
  0x34   : > { %440 = vrot.lane.b32.xlu2 %v1229_v55, %s1072_s19  ;;  %v428_v27 = vrot.slane %v426_v22, 1 }
  0x35   : > { %v361_v51 = vsel %vm1108_vm3, 0, %v340_v46 }
  0x36   : > { %436 = vrot.lane.b32.xlu1 %v401_v61, %s1072_s19  ;;  %v1326_v56 = vsel %vm1112_vm5, %v361_v51, 0 }
  0x37   : > { %v498_v57 = vshll.u32 %v1326_v56, 16  ;;  %v496_v3 = vshrl.u32 %v1326_v56, 16 }
  0x38   : > { %434 = vrot.lane.b32.xlu0 %v394_v62, %s1072_s19 }
  0x3c   : > { %504 = vrot.lane.b32.xlu2 %v394_v62, %s1074_s21 }
  0x3e   : > { %519 = vrot.lane.b32.xlu1 %v455_v28, %s1075_s22  ;;  %v429_v28 = vor.u32 %v428_v27, %v424_v26 }
  0x40   : > { %489 = vrot.lane.b32.xlu0 %v1241_v7, %s1073_s20 }
  0x44   : > { %487 = vrot.lane.b32.xlu2 %v1193_v25, %s1073_s20 }
  0x46   : > { %468 = vrot.lane.b32.xlu1 %v1247_v12, %s1071_s18 }
  0x48   : > { %466 = vrot.lane.b32.xlu0 %v456_v13, %s1071_s18 }
  0x4c   : > { %521 = vrot.lane.b32.xlu2 %v456_v13, %s1075_s22 }
  0x4e   : > { %535 = vrot.lane.b32.xlu1 %v1165_v9, %s1076_s23 }
  0x50   : > { %512 = vrot.lane.b32.xlu0 %v1265_v23, %s1074_s21 }
  0x54   : > { %510 = vrot.lane.b32.xlu2 %v1229_v55, %s1074_s21 }
  0x56   : > { %444 = vrot.lane.b32.xlu1 %v429_v28, %s1072_s19 }
  0x58   : > { %442 = vrot.lane.b32.xlu0 %v1265_v23, %s1072_s19 }
  0x5c   : > { %537 = vrot.lane.b32.xlu2 %v1215_v39, %s1076_s23 }
  0x5e   : > { %527 = vrot.lane.b32.xlu1 %v1201_v30, %s1075_s22 }
  0x60   : > { %485 = vrot.lane.b32.xlu0 %v1184_v20, %s1073_s20 }
  0x64   : > { %483 = vrot.lane.b32.xlu2 %v1215_v39, %s1073_s20 }
  0x66   : > { %553 = vrot.lane.b32.xlu1 %v401_v61, %s1077_s24 }
  0x68   : > { %551 = vrot.lane.b32.xlu0 %v394_v62, %s1077_s24 }
  0x6c   : > { %529 = vrot.lane.b32.xlu2 %v1288_v29, %s1075_s22 }
  0x6e   : > { %506 = vrot.lane.b32.xlu1 %v401_v61, %s1074_s21  ;;  %v500_v61 = vrot.slane %v498_v57, 1 }
  0x70   : > { %476 = vrot.lane.b32.xlu0 %v461_v35, %s1071_s18  ;;  %v501_v0 = vor.u32 %v500_v61, %v496_v3 }
  0x74   : > { %474 = vrot.lane.b32.xlu2 %v1288_v29, %s1071_s18 }
  0x76   : > { %545 = vrot.lane.b32.xlu1 %v1261_v21, %s1076_s23 }
  0x78   : > { %543 = vrot.lane.b32.xlu0 %v1241_v7, %s1076_s23 }
  0x7c   : > { %508 = vrot.lane.b32.xlu2 %v1210_v37, %s1074_s21 }
  0x7e   : > { %v471_v43 = vpop.permute.xlu2 %470  ;;  %491 = vrot.lane.b32.xlu1 %v1261_v21, %s1073_s20 }
  0x80   : > { %569 = vrot.lane.b32.xlu0 %v1247_v12, %s1078_s25 }
  0x84   : > { %567 = vrot.lane.b32.xlu2 %v456_v13, %s1078_s25  ;;  %v463_v47 = vpop.permute.xlu1 %462 }
  0x86   : > { %v439_v49 = vpop.permute.xlu2 %438  ;;  %525 = vrot.lane.b32.xlu1 %v1189_v24, %s1075_s22 }
  0x87   : > { %v593_v52 = vsel %vm583_vm6, %v1184_v20, %v439_v49 }
  0x88   : > { %v431_v48 = vpop.permute.xlu0 %430  ;;  %523 = vrot.lane.b32.xlu0 %v1247_v12, %s1075_s22  ;;  %v610_v54 = vsel %vm600_vm7, %v593_v52, %v471_v43 }
  0x89   : > { %v585_v50 = vsel %vm583_vm6, %v1122_v5, %v431_v48  ;;  %v1035_v48 = vld [vmem:[%s1528_s1 + $0x8] sm:$0xff] }
  0x8a   : > { %v602_v53 = vsel %vm600_vm7, %v585_v50, %v463_v47 }
  0x8c   : > { %493 = vrot.lane.b32.xlu2 %v1326_v56, %s1073_s20 }
  0x8e   : > { %v441_v2 = vpop.permute.xlu2 %440  ;;  %514 = vrot.lane.b32.xlu1 %v429_v28, %s1074_s21 }
  0x8f   : > { %v595_v63 = vsel %vm583_vm6, %v1193_v25, %v441_v2 }
  0x90   : > { %561 = vrot.lane.b32.xlu0 %v429_v28, %s1077_s24  ;;  %v482_v58 = vpop.permute.xlu1 %481 }
  0x92   : > { %v480_v59 = vpop.permute.xlu0 %479 }
  0x93   : > { %v619_v60 = vsel %vm617_vm8, %v602_v53, %v480_v59 }
  0x94   : > { %559 = vrot.lane.b32.xlu2 %v1265_v23, %s1077_s24 }
  0x96   : > { %v505_v62 = vpop.permute.xlu2 %504  ;;  %541 = vrot.lane.b32.xlu1 %v1193_v25, %s1076_s23 }
  0x98   : > { %539 = vrot.lane.b32.xlu0 %v1184_v20, %s1076_s23  ;;  %v465_v1 = vpop.permute.xlu1 %464 }
  0x9a   : > { %v473_v4 = vpop.permute.xlu0 %472 }
  0x9b   : > { %v612_v8 = vsel %vm600_vm7, %v595_v63, %v473_v4 }
  0x9c   : > { %516 = vrot.lane.b32.xlu2 %v501_v0, %s1074_s21 }
  0x9e   : > { %v488_v10 = vpop.permute.xlu2 %487  ;;  %531 = vrot.lane.b32.xlu1 %v461_v35, %s1075_s22 }
  0x9f   : > { %v627_v11 = vsel %vm617_vm8, %v610_v54, %v488_v10 }
  0xa0   : > { %577 = vrot.lane.b32.xlu0 %v461_v35, %s1078_s25  ;;  %v503_v12 = vpop.permute.xlu1 %502 }
  0xa1   : > { %v1349_v25 = vsel %vm634_vm9, %v619_v60, %v503_v12 }
  0xa2   : > { %v433_v20 = vpop.permute.xlu0 %432 }
  0xa3   : > { %v587_v13 = vsel %vm583_vm6, %v1174_v14, %v433_v20  ;;  %v518_v14 = vrot.slane %v1326_v56, 1 }
  0xa4   : > { %575 = vrot.lane.b32.xlu2 %v1288_v29, %s1078_s25  ;;  %v604_v15 = vsel %vm600_vm7, %v587_v13, %v465_v1 }
  0xa5   : > { %v621_v17 = vsel %vm617_vm8, %v604_v15, %v482_v58 }
  0xa6   : > { %v1357_v18 = vpop.permute.xlu2 %521  ;;  %v1360_v19 = vsel %vm634_vm9, %v621_v17, %v505_v62  ;;  %557 = vrot.lane.b32.xlu1 %v1229_v55, %s1077_s24 }
  0xa7   : > { %v655_v1 = vsel %vm651_vm11, %v1360_v19, %v1357_v18 }
  0xa8   : > { %555 = vrot.lane.b32.xlu0 %v1210_v37, %s1077_s24  ;;  %v437_v22 = vpop.permute.xlu1 %436 }
  0xaa   : > { %v435_v23 = vpop.permute.xlu0 %434 }
  0xab   : > { %v589_v32 = vsel %vm583_vm6, %v1165_v9, %v435_v23 }
  0xac   : > { %533 = vrot.lane.b32.xlu2 %v518_v14, %s1075_s22 }
  0xae   : > { %v511_v26 = vpop.permute.xlu2 %510  ;;  %571 = vrot.lane.b32.xlu1 %v1189_v24, %s1078_s25  ;;  %v591_v24 = vsel %vm583_vm6, %v1215_v39, %v437_v22 }
  0xaf   : > { %v1369_v27 = vsel %vm634_vm9, %v627_v11, %v511_v26 }
  0xb0   : > { %549 = vrot.lane.b32.xlu0 %v1122_v5, %s1076_s23  ;;  %v1375_v55 = vpop.permute.xlu1 %519 }
  0xb1   : > { %v653_v61 = vsel %vm651_vm11, %v1349_v25, %v1375_v55 }
  0xb2   : > { %v490_v28 = vpop.permute.xlu0 %489 }
  0xb3   : > { %v629_v37 = vsel %vm617_vm8, %v612_v8, %v490_v28 }
  0xb4   : > { %547 = vrot.lane.b32.xlu2 %v1326_v56, %s1076_s23 }
  0xb6   : > { %v1380_v29 = vpop.permute.xlu2 %537  ;;  %565 = vrot.lane.b32.xlu1 %v1141_v16, %s1077_s24 }
  0xb7   : > { %v672_v4 = vsel %vm668_vm13, %v655_v1, %v1380_v29 }
  0xb8   : > { %563 = vrot.lane.b32.xlu0 %v501_v0, %s1077_s24  ;;  %v469_v31 = vpop.permute.xlu1 %468 }
  0xb9   : > { %v608_v33 = vsel %vm600_vm7, %v591_v24, %v469_v31 }
  0xba   : > { %v467_v34 = vpop.permute.xlu0 %466 }
  0xbb   : > { %v606_v35 = vsel %vm600_vm7, %v589_v32, %v467_v34 }
  0xbc   : > { %573 = vrot.lane.b32.xlu2 %v1201_v30, %s1078_s25  ;;  %v723_v30 = vld [vmem:[%s1528_s1 + $0x10] sm:$0x3] }
  0xbd   : > { %v753_v5 = vunpack.c.l.b16 %v723_v30 }
  0xbe   : > { %v484_v36 = vpop.permute.xlu2 %483 }
  0xbf   : > { %v1394_v16 = vsel %vm617_vm8, %v606_v35, %v484_v36  ;;  %v756_v44 = vpack.c.b16 %v753_v5, %v753_v5 }
  0xc0   : > { %581 = vrot.lane.b32.xlu0 %v454_v6, %s1078_s25  ;;  %v536_v39 = vpop.permute.xlu1 %535 }
  0xc1   : > { %v774_v46 = vsel %vm772_vm10, %v756_v44, 0  ;;  %v670_v62 = vsel %vm668_vm13, %v653_v61, %v536_v39 }
  0xc2   : > { %v513_v38 = vpop.permute.xlu0 %512  ;;  %781 = vmatpush.bf16.msra.mxu0 %v774_v46  ;;  %1037 = vmatpush.bf16.msra.mxu2 %v774_v46 }
  0xc3   : > { %v1400_v9 = vsel %vm634_vm9, %v629_v37, %v513_v38  ;;  %1036 = vmatpush.bf16.msra.mxu1 %v774_v46  ;;  %1038 = vmatpush.bf16.msra.mxu3 %v774_v46 }
  0xc4   : > { %579 = vrot.lane.b32.xlu2 %v518_v14, %s1078_s25 }
  0xc6   : > { %v1403_v40 = vpop.permute.xlu2 %529  ;;  %782 = vmatpush.bf16.msra.mxu0 %v1035_v48  ;;  %1040 = vmatpush.bf16.msra.mxu2 %v1035_v48 }
  0xc7   : > { %1039 = vmatpush.bf16.msra.mxu1 %v1035_v48  ;;  %1041 = vmatpush.bf16.msra.mxu3 %v1035_v48  ;;  %v663_v34 = vsel %vm651_vm11, %v1400_v9, %v1403_v40 }
  0xc8   : > { %v445_v41 = vpop.permute.xlu1 %444 }
  0xc9   : > { %v599_v42 = vsel %vm583_vm6, %v1261_v21, %v445_v41 }
  0xca   : > { %v443_v43 = vpop.permute.xlu0 %442 }
  0xcb   : > { %v597_v6 = vsel %vm583_vm6, %v1241_v7, %v443_v43  ;;  %v1034_v7 = vld [vmem:[%s1528_s1] sm:$0xff] }
  0xcc   : > { %783 = vmatpush.bf16.msra.mxu0 %v1034_v7  ;;  %1043 = vmatpush.bf16.msra.mxu2 %v1034_v7 }
  0xcd   : > { %1042 = vmatpush.bf16.msra.mxu1 %v1034_v7  ;;  %1044 = vmatpush.bf16.msra.mxu3 %v1034_v7 }
  0xce   : > { %v475_v45 = vpop.permute.xlu2 %474 }
  0xcf   : > { %v614_v47 = vsel %vm600_vm7, %v597_v6, %v475_v45 }
  0xd0   : > { %v528_v21 = vpop.permute.xlu1 %527 }
  0xd1   : > { %v661_v32 = vsel %vm651_vm11, %v1369_v27, %v528_v21 }
  0xd2   : > { %v486_v49 = vpop.permute.xlu0 %485 }
  0xd3   : > { %v1417_v50 = vsel %vm617_vm8, %v608_v33, %v486_v49 }
  0xd6   : > { %v1422_v51 = vpop.permute.xlu2 %508 }
  0xd7   : > { %v642_v45 = vsel %vm634_vm9, %v1417_v50, %v1422_v51 }
  0xd8   : > { %v554_v52 = vpop.permute.xlu1 %553 }
  0xd9   : > { %v689_v11 = vsel %vm685_vm12, %v672_v4, %v554_v52 }
  0xda   : > { %v552_v53 = vpop.permute.xlu0 %551 }
  0xdb   : > { %v687_v63 = vsel %vm685_vm12, %v670_v62, %v552_v53 }
  0xde   : > { %v568_v54 = vpop.permute.xlu2 %567 }
  0xdf   : > { %v704_v8 = vsel %vm702_vm14, %v687_v63, %v568_v54 }
  0xe0   : > { %v1424_v56 = vpop.permute.xlu1 %506  ;;  %v732_v13 = vunpack.c.l.b16 %v704_v8 }
  0xe1   : > { %v640_v7 = vsel %vm634_vm9, %v1394_v16, %v1424_v56 }
  0xe2   : > { %v477_v2 = vpop.permute.xlu0 %476 }
  0xe3   : > { %v616_v57 = vsel %vm600_vm7, %v599_v42, %v477_v2 }
  0xe6   : > { %v494_v58 = vpop.permute.xlu2 %493 }
  0xe7   : > { %v633_v59 = vsel %vm617_vm8, %v616_v57, %v494_v58 }
  0xe8   : > { %v546_v60 = vpop.permute.xlu1 %545 }
  0xe9   : > { %v680_v39 = vsel %vm668_vm13, %v663_v34, %v546_v60 }
  0xea   : > { %v544_v3 = vpop.permute.xlu0 %543 }
  0xeb   : > { %v678_v33 = vsel %vm668_vm13, %v661_v32, %v544_v3 }
  0xee   : > { %v560_v0 = vpop.permute.xlu2 %559 }
  0xef   : > { %v695_v35 = vsel %vm685_vm12, %v678_v33, %v560_v0 }
  0xf0   : > { %v492_v10 = vpop.permute.xlu1 %491 }
  0xf1   : > { %v631_v12 = vsel %vm617_vm8, %v614_v47, %v492_v10 }
  0xf2   : > { %v570_v25 = vpop.permute.xlu0 %569 }
  0xf3   : > { %v706_v20 = vsel %vm702_vm14, %v689_v11, %v570_v25 }
  0xf4   : > { %v733_v15 = vunpack.c.l.b16 %v706_v20 }
  0xf6   : > { %v517_v17 = vpop.permute.xlu2 %516  ;;  %v740_v14 = vpack.c.b16 %v733_v15, %v732_v13 }
  0xf7   : > { %v650_v18 = vsel %vm634_vm9, %v633_v59, %v517_v17 }
  0xf8   : > { %1026 = vmatmul.msk.bf16.vlgmr.msra.gmra.mxu0 %vm759_vm15, %v740_v14  ;;  %v526_v19 = vpop.permute.xlu1 %525 }
  0xf9   : > { %v659_v47 = vsel %vm651_vm11, %v642_v45, %v526_v19 }
  0xfa   : > { %v524_v22 = vpop.permute.xlu0 %523 }
  0xfb   : > { %v657_v52 = vsel %vm651_vm11, %v640_v7, %v524_v22 }
  0xfe   : > { %v576_v23 = vpop.permute.xlu2 %575 }
  0xff   : > { %v712_v38 = vsel %vm702_vm14, %v695_v35, %v576_v23 }
 0x100   : > { %v515_v26 = vpop.permute.xlu1 %514  ;;  %v736_v6 = vunpack.c.l.b16 %v712_v38 }
 0x101   : > { %v648_v55 = vsel %vm634_vm9, %v631_v12, %v515_v26 }
 0x102   : > { %v562_v28 = vpop.permute.xlu0 %561 }
 0x103   : > { %v697_v30 = vsel %vm685_vm12, %v680_v39, %v562_v28 }
 0x106   : > { %v534_v37 = vpop.permute.xlu2 %533 }
 0x107   : > { %v667_v29 = vsel %vm651_vm11, %v650_v18, %v534_v37 }
 0x108   : > { %v542_v24 = vpop.permute.xlu1 %541 }
 0x109   : > { %v676_v48 = vsel %vm668_vm13, %v659_v47, %v542_v24 }
 0x10a   : > { %v540_v31 = vpop.permute.xlu0 %539 }
 0x10b   : > { %v674_v53 = vsel %vm668_vm13, %v657_v52, %v540_v31 }
 0x10e   : > { %v548_v36 = vpop.permute.xlu2 %547 }
 0x110   : > { %v532_v41 = vpop.permute.xlu1 %531 }
 0x111   : > { %v665_v42 = vsel %vm651_vm11, %v648_v55, %v532_v41 }
 0x112   : > { %v578_v43 = vpop.permute.xlu0 %577  ;;  %v682_v5 = vsel %vm668_vm13, %v665_v42, %v548_v36 }
 0x113   : > { %v714_v27 = vsel %vm702_vm14, %v697_v30, %v578_v43 }
 0x114   : > { %v737_v44 = vunpack.c.l.b16 %v714_v27 }
 0x116   : > { %v742_v9 = vpack.c.b16 %v737_v44, %v736_v6  ;;  %v574_v49 = vpop.permute.xlu2 %573 }
 0x118   : > { %1028 = vmatmul.msk.bf16.vlgmr.msra.gmra.mxu2 %vm759_vm15, %v742_v9  ;;  %v558_v40 = vpop.permute.xlu1 %557 }
 0x119   : > { %v693_v21 = vsel %vm685_vm12, %v676_v48, %v558_v40 }
 0x11a   : > { %v556_v46 = vpop.permute.xlu0 %555  ;;  %v710_v54 = vsel %vm702_vm14, %v693_v21, %v574_v49 }
 0x11b   : > { %v691_v50 = vsel %vm685_vm12, %v674_v53, %v556_v46  ;;  %v735_v58 = vunpack.c.l.b16 %v710_v54 }
 0x11e   : > { %v580_v56 = vpop.permute.xlu2 %579 }
 0x120   : > { %v572_v51 = vpop.permute.xlu1 %571 }
 0x121   : > { %v708_v2 = vsel %vm702_vm14, %v691_v50, %v572_v51 }
 0x122   : > { %v550_v57 = vpop.permute.xlu0 %549  ;;  %v734_v59 = vunpack.c.l.b16 %v708_v2 }
 0x123   : > { %v684_v60 = vsel %vm668_vm13, %v667_v29, %v550_v57 }
 0x124   : > { %v741_v3 = vpack.c.b16 %v735_v58, %v734_v59 }
 0x126   : > { %1027 = vmatmul.msk.bf16.vlgmr.msra.gmra.mxu1 %vm759_vm15, %v741_v3 }
 0x128   : > { %v566_v16 = vpop.permute.xlu1 %565 }
 0x129   : > { %v701_v61 = vsel %vm685_vm12, %v684_v60, %v566_v16 }
 0x12a   : > { %v564_v62 = vpop.permute.xlu0 %563 }
 0x12b   : > { %v699_v63 = vsel %vm685_vm12, %v682_v5, %v564_v62 }
 0x12c   : > { %v716_v0 = vsel %vm702_vm14, %v699_v63, %v580_v56 }
 0x12d   : > { %v738_v8 = vunpack.c.l.b16 %v716_v0 }
 0x132   : > { %v582_v1 = vpop.permute.xlu0 %581 }
 0x133   : > { %v718_v4 = vsel %vm702_vm14, %v701_v61, %v582_v1 }
 0x134   : > { %v739_v10 = vunpack.c.l.b16 %v718_v4 }
 0x136   : > { %v743_v11 = vpack.c.b16 %v739_v10, %v738_v8 }
 0x138   : > { %1029 = vmatmul.msk.bf16.vlgmr.msra.gmra.mxu3 %vm759_vm15, %v743_v11 }
 0x175   : > { %v785_v12 = vpop.f32.mrf.mxu0 }
 0x176   : > { %v805_v25 = vpack.c.bf16 %v785_v12, %v785_v12  ;;  %v843_v28 = vmul.f32 %v785_v12, %v785_v12  ;;  %v822_v24 = vsel %vm600_vm7, %v785_v12, 0.0 }
 0x178   : > { %814 = vst.msk [vmem:[%s1485_s8] sm:$0xf] %vm813_vm1, %v805_v25  ;;  %v851_v35 = vsel %vm600_vm7, %v843_v28, 0.0 }
 0x17d   : > { %v787_v20 = vpop.f32.mrf.mxu0 }
 0x17e   : > { %v806_v13 = vpack.c.bf16 %v787_v20, %v787_v20  ;;  %v844_v55 = vmul.f32 %v787_v20, %v787_v20  ;;  %v823_v37 = vsel %vm600_vm7, %v787_v20, 0.0 }
 0x17f   : > { %v824_v34 = vadd.f32 %v823_v37, %v822_v24 }
 0x180   : > { %815 = vst.msk [vmem:[%s1485_s8 + $0x4] sm:$0xf] %vm813_vm1, %v806_v13  ;;  %v852_v31 = vsel %vm600_vm7, %v844_v55, 0.0 }
 0x181   : > { %v853_v38 = vadd.f32 %v852_v31, %v851_v35 }
 0x19b   : > { %v795_v15 = vpop.f32.mrf.mxu2 }
 0x19c   : > { %v809_v17 = vpack.c.bf16 %v795_v15, %v795_v15  ;;  %v847_v27 = vmul.f32 %v795_v15, %v795_v15  ;;  %v829_v44 = vsel %vm600_vm7, %v795_v15, 0.0 }
 0x19e   : > { %818 = vst.msk [vmem:[%s1485_s8 + $0x10] sm:$0xf] %vm813_vm1, %v809_v17  ;;  %v858_v45 = vsel %vm600_vm7, %v847_v27, 0.0 }
 0x1a3   : > { %v797_v14 = vpop.f32.mrf.mxu2  ;;  %v790_v19 = vpop.f32.mrf.mxu1 }
 0x1a4   : > { %v810_v18 = vpack.c.bf16 %v797_v14, %v797_v14  ;;  %v807_v22 = vpack.c.bf16 %v790_v19, %v790_v19  ;;  %v845_v29 = vmul.f32 %v790_v19, %v790_v19  ;;  %v825_v32 = vsel %vm600_vm7, %v790_v19, 0.0 }
 0x1a5   : > { %v826_v41 = vadd.f32 %v825_v32, %v824_v34  ;;  %v848_v46 = vmul.f32 %v797_v14, %v797_v14  ;;  %v831_v21 = vsel %vm600_vm7, %v797_v14, 0.0 }
 0x1a6   : > { %819 = vst.msk [vmem:[%s1485_s8 + $0x14] sm:$0xf] %vm813_vm1, %v810_v18  ;;  %v854_v36 = vsel %vm600_vm7, %v845_v29, 0.0 }
 0x1a7   : > { %816 = vst.msk [vmem:[%s1485_s8 + $0x8] sm:$0xf] %vm813_vm1, %v807_v22  ;;  %v855_v42 = vadd.f32 %v854_v36, %v853_v38  ;;  %v860_v52 = vsel %vm600_vm7, %v848_v46, 0.0 }
 0x1ab   : > { %v792_v23 = vpop.f32.mrf.mxu1 }
 0x1ac   : > { %v808_v26 = vpack.c.bf16 %v792_v23, %v792_v23  ;;  %v846_v33 = vmul.f32 %v792_v23, %v792_v23  ;;  %v827_v39 = vsel %vm600_vm7, %v792_v23, 0.0 }
 0x1ad   : > { %v828_v43 = vadd.f32 %v827_v39, %v826_v41 }
 0x1ae   : > { %817 = vst.msk [vmem:[%s1485_s8 + $0xc] sm:$0xf] %vm813_vm1, %v808_v26  ;;  %v856_v30 = vsel %vm600_vm7, %v846_v33, 0.0 }
 0x1af   : > { %v857_v5 = vadd.f32 %v856_v30, %v855_v42  ;;  %v830_v40 = vadd.f32 %v829_v44, %v828_v43 }
 0x1b1   : > { %v859_v48 = vadd.f32 %v858_v45, %v857_v5  ;;  %v832_v7 = vadd.f32 %v831_v21, %v830_v40 }
 0x1b3   : > { %v861_v50 = vadd.f32 %v860_v52, %v859_v48 }
 0x1bb   : > { %v800_v6 = vpop.f32.mrf.mxu3 }
 0x1bc   : > { %v811_v9 = vpack.c.bf16 %v800_v6, %v800_v6  ;;  %v849_v47 = vmul.f32 %v800_v6, %v800_v6  ;;  %v833_v49 = vsel %vm600_vm7, %v800_v6, 0.0 }
 0x1bd   : > { %v834_v54 = vadd.f32 %v833_v49, %v832_v7 }
 0x1be   : > { %820 = vst.msk [vmem:[%s1485_s8 + $0x18] sm:$0xf] %vm813_vm1, %v811_v9  ;;  %v862_v53 = vsel %vm600_vm7, %v849_v47, 0.0 }
 0x1bf   : > { %v863_v59 = vadd.f32 %v862_v53, %v861_v50 }
 0x1c3   : > { %v802_v51 = vpop.f32.mrf.mxu3 }
 0x1c4   : > { %v812_v2 = vpack.c.bf16 %v802_v51, %v802_v51  ;;  %v835_v57 = vsel %vm600_vm7, %v802_v51, 0.0  ;;  %v850_v58 = vmul.f32 %v802_v51, %v802_v51 }
 0x1c5   : > { %v836_v60 = vadd.f32 %v835_v57, %v834_v54 }
 0x1c6   : > { %821 = vst.msk [vmem:[%s1485_s8 + $0x1c] sm:$0xf] %vm813_vm1, %v812_v2  ;;  %v864_v3 = vsel %vm600_vm7, %v850_v58, 0.0 }
 0x1c7   : > { %v837_v16 = vrot.slane %v836_v60, 4  ;;  %v865_v56 = vadd.f32 %v864_v3, %v863_v59 }
 0x1c9   : > { %v838_v61 = vadd.f32 %v837_v16, %v836_v60  ;;  %v866_v62 = vrot.slane %v865_v56, 4 }
 0x1cb   : > { %v839_v63 = vrot.slane %v838_v61, 2  ;;  %v867_v0 = vadd.f32 %v866_v62, %v865_v56 }
 0x1cd   : > { %v840_v1 = vadd.f32 %v839_v63, %v838_v61  ;;  %v868_v4 = vrot.slane %v867_v0, 2 }
 0x1cf   : > { %v841_v8 = vrot.slane %v840_v1, 1  ;;  %v869_v10 = vadd.f32 %v868_v4, %v867_v0 }
 0x1d1   : > { %v870_v11 = vrot.slane %v869_v10, 1  ;;  %v842_v12 = vadd.f32 %v841_v8, %v840_v1 }
 0x1d3   : > { %v871_v25 = vadd.f32 %v870_v11, %v869_v10 }
 0x1d5   : > { %v873_v20 = vsel %vm350_vm0, %v842_v12, %v871_v25 }
 0x1d6   : > { %875 = vst.msk [vmem:[%s181_s14] sm:$0x3] %vm874_vm2, %v873_v20 }
 0x1d7 PF: > { %s14_s12 = sadd.s32 1, %s1068_s12  }
 0x1d8   : > { %p11_p4 = scmp.ge.s32.totalorder %s14_s12, 4  }
 0x1da   :  { %13 = sbr.rel (!%p11_p4) target bundleno = 1 (0x1), region = 101 }

</bundles_post_ra>
